<compile_context>
chip_gen: v7x
topology: tpu7x:2x2x1
jax: 0.10.0
libtpu: 0.0.40
codegen_flags: <defaults>
</compile_context>

<pallas_src>
import math
import functools

import jax
import jax.numpy as jnp
from jax.experimental import pallas as pl
from jax.experimental.pallas import tpu as pltpu

# Sized for production tiles; keep the resident set well under v7x's 64 MiB VMEM.
_VMEM_LIMIT_BYTES = 64 * 1024 * 1024


def _layernorm(v, gamma, beta, eps=1e-5):
    mean = jnp.mean(v, axis=-1, keepdims=True)
    var = jnp.mean((v - mean) ** 2, axis=-1, keepdims=True)
    return (v - mean) * jax.lax.rsqrt(var + eps) * gamma + beta


def _proj_kernel(x_ref, wdq_ref, wuq_ref, wdkv_ref, wukv_ref,
                 qln_w_ref, qln_b_ref, kvln_w_ref, kvln_b_ref,
                 q_ref, k_ref, v_ref, ckv_ref, *, d_model, n_heads):
    dh = d_model // n_heads
    x = x_ref[0]                                    # (TS, D) f32
    xb = x.astype(jnp.bfloat16)

    # Q path: down-proj (bf16 MXU) -> LayerNorm (f32) -> up-proj (bf16 MXU).
    cq = jnp.dot(xb, wdq_ref[...], preferred_element_type=jnp.float32)
    cq = _layernorm(cq, qln_w_ref[...], qln_b_ref[...])
    Q = jnp.dot(cq.astype(jnp.bfloat16), wuq_ref[...],
                preferred_element_type=jnp.float32)             # (TS, D)

    # KV path: kept f32 through down-proj + LN so the returned cache is f32-exact.
    ckv = jnp.dot(x, wdkv_ref[...], preferred_element_type=jnp.float32)
    ckv = _layernorm(ckv, kvln_w_ref[...], kvln_b_ref[...])     # (TS, kv_proj) f32
    KV = jnp.dot(ckv.astype(jnp.bfloat16), wukv_ref[...],
                 preferred_element_type=jnp.float32)            # (TS, 2D)
    K = KV[:, :d_model]
    V = KV[:, d_model:]

    # Split heads once per sequence tile; write (H, TS, dh) layout for attention.
    for h in range(n_heads):
        lo = h * dh
        q_ref[0, h] = Q[:, lo:lo + dh].astype(q_ref.dtype)
        k_ref[0, h] = K[:, lo:lo + dh].astype(k_ref.dtype)
        v_ref[0, h] = V[:, lo:lo + dh].astype(v_ref.dtype)

    ckv_ref[0] = ckv.astype(ckv_ref.dtype)


def _attn_kernel(q_ref, k_ref, v_ref, wo_t_ref, o_ref,
                 m_sc, l_sc, acc_sc,
                 *, d_model, n_heads, dh, tq, tk, sm_scale):
    qi = pl.program_id(1)
    ki = pl.program_id(2)

    @pl.when(ki == 0)
    def _init():
        m_sc[...] = jnp.full_like(m_sc, -jnp.inf)
        l_sc[...] = jnp.zeros_like(l_sc)
        acc_sc[...] = jnp.zeros_like(acc_sc)

    # Skip KV tiles that are entirely in the future (fully masked by causality).
    @pl.when(ki * tk <= qi * tq + (tq - 1))
    def _update():
        q = q_ref[0]                                # (H, TQ, dh) bf16
        k = k_ref[0]                                # (H, TK, dh) bf16
        v = v_ref[0]                                # (H, TK, dh) bf16

        s = jnp.einsum('hqd,hkd->hqk', q, k,
                       preferred_element_type=jnp.float32) * sm_scale
        rows = qi * tq + jax.lax.broadcasted_iota(jnp.int32, (tq, tk), 0)
        cols = ki * tk + jax.lax.broadcasted_iota(jnp.int32, (tq, tk), 1)
        s = jnp.where((rows >= cols)[None, :, :], s, -jnp.inf)

        m_prev = m_sc[...]
        m_new = jnp.maximum(m_prev, s.max(axis=-1, keepdims=True))
        alpha = jnp.exp(m_prev - m_new)
        p = jnp.exp(s - m_new)
        l_sc[...] = alpha * l_sc[...] + p.sum(axis=-1, keepdims=True)
        acc_sc[...] = alpha * acc_sc[...] + jnp.einsum(
            'hqk,hkd->hqd', p.astype(v.dtype), v,
            preferred_element_type=jnp.float32)
        m_sc[...] = m_new

    @pl.when(ki == pl.num_programs(2) - 1)
    def _finalize():
        o = acc_sc[...] * pl.reciprocal(l_sc[...], approx=True)   # (H, TQ, dh) f32
        ob = o.astype(wo_t_ref.dtype)
        out = jnp.zeros((tq, d_model), jnp.float32)
        # Fused per-head output projection: no concat, no narrow-lane store.
        for h in range(n_heads):
            out = out + jnp.dot(ob[h], wo_t_ref[h],
                                preferred_element_type=jnp.float32)
        o_ref[0] = out.astype(o_ref.dtype)


def ropeless_mla_forward(x, params, n_heads, *, seq_tile=256):
    """x: [B, S, D] float32. Returns (output [B,S,D] f32, compressed_kv [B,S,kv_proj] f32)."""
    B, S, D = x.shape
    q_proj = D // 2
    kv_proj = 2 * D // 3
    dh = D // n_heads
    assert n_heads * dh == D

    ts = min(seq_tile, S)
    assert S % ts == 0, "sequence length must be a multiple of the sequence tile"
    n_s = S // ts

    bf16, f32 = jnp.bfloat16, jnp.float32
    W_dq = params["W_dq"].astype(bf16)
    W_uq = params["W_uq"].astype(bf16)
    W_dkv = params["W_dkv"].astype(f32)            # keep ckv cache path f32
    W_ukv = params["W_ukv"].astype(bf16)
    # Host-side pre-transpose + head split of W_o: (D, D) -> W_o.T as (H, dh, D).
    W_oT_h = jnp.transpose(params["W_o"]).reshape(n_heads, dh, D).astype(bf16)
    q_ln_w = params["q_ln_w"].astype(f32)
    q_ln_b = params["q_ln_b"].astype(f32)
    kv_ln_w = params["kv_ln_w"].astype(f32)
    kv_ln_b = params["kv_ln_b"].astype(f32)

    # ---- Kernel 1: projections + head split (grid over batch x sequence tiles) ----
    proj_kernel = functools.partial(_proj_kernel, d_model=D, n_heads=n_heads)
    const2d = lambda shape: pl.BlockSpec(shape, lambda b, si: (0, 0))
    q_h, k_h, v_h, ckv = pl.pallas_call(
        proj_kernel,
        out_shape=(
            jax.ShapeDtypeStruct((B, n_heads, S, dh), bf16),
            jax.ShapeDtypeStruct((B, n_heads, S, dh), bf16),
            jax.ShapeDtypeStruct((B, n_heads, S, dh), bf16),
            jax.ShapeDtypeStruct((B, S, kv_proj), f32),
        ),
        grid=(B, n_s),
        in_specs=[
            pl.BlockSpec((1, ts, D), lambda b, si: (b, si, 0)),   # x tile
            const2d((D, q_proj)),                                 # W_dq (bf16)
            const2d((q_proj, D)),                                 # W_uq (bf16)
            const2d((D, kv_proj)),                                # W_dkv (f32)
            const2d((kv_proj, 2 * D)),                            # W_ukv (bf16)
            const2d((1, q_proj)),                                 # q LN gamma
            const2d((1, q_proj)),                                 # q LN beta
            const2d((1, kv_proj)),                                # kv LN gamma
            const2d((1, kv_proj)),                                # kv LN beta
        ],
        out_specs=(
            pl.BlockSpec((1, n_heads, ts, dh), lambda b, si: (b, 0, si, 0)),
            pl.BlockSpec((1, n_heads, ts, dh), lambda b, si: (b, 0, si, 0)),
            pl.BlockSpec((1, n_heads, ts, dh), lambda b, si: (b, 0, si, 0)),
            pl.BlockSpec((1, ts, kv_proj), lambda b, si: (b, si, 0)),
        ),
        compiler_params=pltpu.CompilerParams(
            dimension_semantics=("parallel", "parallel"),
            vmem_limit_bytes=_VMEM_LIMIT_BYTES),
    )(x, W_dq, W_uq, W_dkv, W_ukv, q_ln_w, q_ln_b, kv_ln_w, kv_ln_b)

    # ---- Kernel 2: flash-style causal attention + fused output projection ----
    tq = tk = ts
    n_q, n_k = S // tq, S // tk
    attn_kernel = functools.partial(
        _attn_kernel, d_model=D, n_heads=n_heads, dh=dh, tq=tq, tk=tk,
        sm_scale=1.0 / math.sqrt(dh))
    out = pl.pallas_call(
        attn_kernel,
        out_shape=jax.ShapeDtypeStruct((B, S, D), f32),
        grid=(B, n_q, n_k),
        in_specs=[
            pl.BlockSpec((1, n_heads, tq, dh), lambda b, qi, ki: (b, 0, qi, 0)),
            pl.BlockSpec((1, n_heads, tk, dh), lambda b, qi, ki: (b, 0, ki, 0)),
            pl.BlockSpec((1, n_heads, tk, dh), lambda b, qi, ki: (b, 0, ki, 0)),
            pl.BlockSpec((n_heads, dh, D), lambda b, qi, ki: (0, 0, 0)),  # W_o.T per head
        ],
        out_specs=pl.BlockSpec((1, tq, D), lambda b, qi, ki: (b, qi, 0)),
        scratch_shapes=[
            pltpu.VMEM((n_heads, tq, 1), f32),     # running max m
            pltpu.VMEM((n_heads, tq, 1), f32),     # running denom l
            pltpu.VMEM((n_heads, tq, dh), f32),    # unnormalized accumulator
        ],
        compiler_params=pltpu.CompilerParams(
            dimension_semantics=("parallel", "parallel", "arbitrary"),
            vmem_limit_bytes=_VMEM_LIMIT_BYTES),
    )(q_h, k_h, v_h, W_oT_h)

    return out, ckv


def _reference_forward(x, params, n_heads):
    """Pure-JAX f32 reference mirroring the PyTorch module (kv_cache=None, past_length=0)."""
    B, S, D = x.shape
    dh = D // n_heads
    cq = _layernorm(x @ params["W_dq"], params["q_ln_w"], params["q_ln_b"])
    Q = cq @ params["W_uq"]
    ckv = _layernorm(x @ params["W_dkv"], params["kv_ln_w"], params["kv_ln_b"])
    KV = ckv @ params["W_ukv"]
    K, V = KV[..., :D], KV[..., D:]
    qh = Q.reshape(B, S, n_heads, dh).transpose(0, 2, 1, 3)
    kh = K.reshape(B, S, n_heads, dh).transpose(0, 2, 1, 3)
    vh = V.reshape(B, S, n_heads, dh).transpose(0, 2, 1, 3)
    s = jnp.einsum("bhqd,bhkd->bhqk", qh, kh) / math.sqrt(dh)
    mask = jnp.tril(jnp.ones((S, S), dtype=bool))
    s = jnp.where(mask[None, None], s, -jnp.inf)
    p = jax.nn.softmax(s, axis=-1)
    o = jnp.einsum("bhqk,bhkd->bhqd", p, vh)
    o = o.transpose(0, 2, 1, 3).reshape(B, S, D)
    return o @ params["W_o"].T, ckv


def init_params(key, d_model, n_heads):
    q_proj = d_model // 2
    kv_proj = 2 * d_model // 3
    ks = jax.random.split(key, 5)
    return {
        "W_dq": 0.01 * jax.random.normal(ks[0], (d_model, q_proj), jnp.float32),
        "W_uq": 0.01 * jax.random.normal(ks[1], (q_proj, d_model), jnp.float32),
        "W_dkv": 0.01 * jax.random.normal(ks[2], (d_model, kv_proj), jnp.float32),
        "W_ukv": 0.01 * jax.random.normal(ks[3], (kv_proj, 2 * d_model), jnp.float32),
        "W_o": 0.01 * jax.random.normal(ks[4], (d_model, d_model), jnp.float32),
        # nn.LayerNorm default init (kept as (1, N) for TPU-friendly layout).
        "q_ln_w": jnp.ones((1, q_proj), jnp.float32),
        "q_ln_b": jnp.zeros((1, q_proj), jnp.float32),
        "kv_ln_w": jnp.ones((1, kv_proj), jnp.float32),
        "kv_ln_b": jnp.zeros((1, kv_proj), jnp.float32),
    }


if __name__ == "__main__":
    B, S = 2, 8
    d_model, n_heads = 48, 4   # q_proj=24, kv_proj=32, dh=12

    key = jax.random.PRNGKey(0)
    kx, kp = jax.random.split(key)
    x = jax.random.normal(kx, (B, S, d_model), jnp.float32)
    params = init_params(kp, d_model, n_heads)

    out, ckv = ropeless_mla_forward(x, params, n_heads)
    out = jax.block_until_ready(out)
    ckv = jax.block_until_ready(ckv)

    ref_out, ref_ckv = _reference_forward(x, params, n_heads)
    assert out.shape == (B, S, d_model)
    assert ckv.shape == (B, S, 2 * d_model // 3)
    # ckv path is f32 end-to-end -> tight tolerance; attention uses bf16 MXU
    # operands with f32 accumulation -> slightly looser output tolerance.
    assert bool(jnp.allclose(ckv, ref_ckv, atol=2e-4, rtol=1e-3)), \
        float(jnp.max(jnp.abs(ckv - ref_ckv)))
    assert bool(jnp.allclose(out, ref_out, atol=5e-4, rtol=2e-2)), \
        float(jnp.max(jnp.abs(out - ref_out)))

    print("KERNEL_OK")
</pallas_src>

<mosaic_0001>
module attributes {stable_mosaic.version = 11 : i64} {
  func.func @_proj_kernel(%arg0: i32, %arg1: i32, %arg2: memref<1x8x48xf32, #tpu.memory_space<vmem>>, %arg3: memref<48x24xbf16, #tpu.memory_space<vmem>>, %arg4: memref<24x48xbf16, #tpu.memory_space<vmem>>, %arg5: memref<48x32xf32, #tpu.memory_space<vmem>>, %arg6: memref<32x96xbf16, #tpu.memory_space<vmem>>, %arg7: memref<1x24xf32, #tpu.memory_space<vmem>>, %arg8: memref<1x24xf32, #tpu.memory_space<vmem>>, %arg9: memref<1x32xf32, #tpu.memory_space<vmem>>, %arg10: memref<1x32xf32, #tpu.memory_space<vmem>>, %arg11: memref<1x4x8x12xbf16, #tpu.memory_space<vmem>>, %arg12: memref<1x4x8x12xbf16, #tpu.memory_space<vmem>>, %arg13: memref<1x4x8x12xbf16, #tpu.memory_space<vmem>>, %arg14: memref<1x8x32xf32, #tpu.memory_space<vmem>>) attributes {dimension_semantics = [#tpu.dimension_semantics<parallel>, #tpu.dimension_semantics<parallel>], iteration_bounds = array<i64: 2, 1>, scalar_prefetch = 0 : i64, scratch_operands = 0 : i64, tpu.core_type = #tpu.core_type<tc>, window_params = [{transform_indices = @transform_0, window_bounds = array<i64: 1, 8, 48>}, {pipeline_mode = #tpu.pipeline_mode<synchronous>, transform_indices = @transform_1, window_bounds = array<i64: 48, 24>}, {pipeline_mode = #tpu.pipeline_mode<synchronous>, transform_indices = @transform_2, window_bounds = array<i64: 24, 48>}, {pipeline_mode = #tpu.pipeline_mode<synchronous>, transform_indices = @transform_3, window_bounds = array<i64: 48, 32>}, {pipeline_mode = #tpu.pipeline_mode<synchronous>, transform_indices = @transform_4, window_bounds = array<i64: 32, 96>}, {pipeline_mode = #tpu.pipeline_mode<synchronous>, transform_indices = @transform_5, window_bounds = array<i64: 1, 24>}, {pipeline_mode = #tpu.pipeline_mode<synchronous>, transform_indices = @transform_6, window_bounds = array<i64: 1, 24>}, {pipeline_mode = #tpu.pipeline_mode<synchronous>, transform_indices = @transform_7, window_bounds = array<i64: 1, 32>}, {pipeline_mode = #tpu.pipeline_mode<synchronous>, transform_indices = @transform_8, window_bounds = array<i64: 1, 32>}, {transform_indices = @transform_9, window_bounds = array<i64: 1, 4, 8, 12>}, {transform_indices = @transform_10, window_bounds = array<i64: 1, 4, 8, 12>}, {transform_indices = @transform_11, window_bounds = array<i64: 1, 4, 8, 12>}, {transform_indices = @transform_12, window_bounds = array<i64: 1, 8, 32>}]} {
    %c0 = arith.constant 0 : index
    %c0_0 = arith.constant 0 : index
    %c0_1 = arith.constant 0 : index
    %0 = vector.load %arg2[%c0, %c0_0, %c0_1] : memref<1x8x48xf32, #tpu.memory_space<vmem>>, vector<1x8x48xf32>
    %1 = vector.shape_cast %0 : vector<1x8x48xf32> to vector<8x48xf32>
    %2 = arith.truncf %1 : vector<8x48xf32> to vector<8x48xbf16>
    %c0_2 = arith.constant 0 : index
    %c0_3 = arith.constant 0 : index
    %3 = vector.load %arg3[%c0_2, %c0_3] : memref<48x24xbf16, #tpu.memory_space<vmem>>, vector<48x24xbf16>
    %cst = arith.constant dense<0.000000e+00> : vector<8x24xf32>
    %4 = tpu.matmul %2, %3, %cst {dimension_numbers = #tpu.dot_dimension_numbers<[1], [0], [0], [1], [0, 0, 1, 1], [], []>} : vector<8x48xbf16>, vector<48x24xbf16>, vector<8x24xf32> -> vector<8x24xf32>
    %c0_4 = arith.constant 0 : index
    %c0_5 = arith.constant 0 : index
    %5 = vector.load %arg7[%c0_4, %c0_5] : memref<1x24xf32, #tpu.memory_space<vmem>>, vector<1x24xf32>
    %c0_6 = arith.constant 0 : index
    %c0_7 = arith.constant 0 : index
    %6 = vector.load %arg8[%c0_6, %c0_7] : memref<1x24xf32, #tpu.memory_space<vmem>>, vector<1x24xf32>
    %cst_8 = arith.constant dense<0.000000e+00> : vector<8xf32>
    %7 = vector.multi_reduction <add>, %4, %cst_8 [1] : vector<8x24xf32> to vector<8xf32>
    %8 = vector.shape_cast %7 : vector<8xf32> to vector<8x1xf32>
    %cst_9 = arith.constant 2.400000e+01 : f32
    %9 = vector.broadcast %cst_9 : f32 to vector<8x1xf32>
    %10 = arith.divf %8, %9 : vector<8x1xf32>
    %11 = vector.broadcast %10 : vector<8x1xf32> to vector<8x24xf32>
    %12 = arith.subf %4, %11 : vector<8x24xf32>
    %13 = arith.mulf %12, %12 : vector<8x24xf32>
    %cst_10 = arith.constant dense<0.000000e+00> : vector<8xf32>
    %14 = vector.multi_reduction <add>, %13, %cst_10 [1] : vector<8x24xf32> to vector<8xf32>
    %15 = vector.shape_cast %14 : vector<8xf32> to vector<8x1xf32>
    %cst_11 = arith.constant 2.400000e+01 : f32
    %16 = vector.broadcast %cst_11 : f32 to vector<8x1xf32>
    %17 = arith.divf %15, %16 : vector<8x1xf32>
    %18 = vector.broadcast %10 : vector<8x1xf32> to vector<8x24xf32>
    %19 = arith.subf %4, %18 : vector<8x24xf32>
    %cst_12 = arith.constant 9.99999974E-6 : f32
    %20 = vector.broadcast %cst_12 : f32 to vector<8x1xf32>
    %21 = arith.addf %17, %20 : vector<8x1xf32>
    %22 = math.rsqrt %21 : vector<8x1xf32>
    %23 = vector.broadcast %22 : vector<8x1xf32> to vector<8x24xf32>
    %24 = arith.mulf %19, %23 : vector<8x24xf32>
    %25 = vector.broadcast %5 : vector<1x24xf32> to vector<8x24xf32>
    %26 = arith.mulf %24, %25 : vector<8x24xf32>
    %27 = vector.broadcast %6 : vector<1x24xf32> to vector<8x24xf32>
    %28 = arith.addf %26, %27 : vector<8x24xf32>
    %29 = arith.truncf %28 : vector<8x24xf32> to vector<8x24xbf16>
    %c0_13 = arith.constant 0 : index
    %c0_14 = arith.constant 0 : index
    %30 = vector.load %arg4[%c0_13, %c0_14] : memref<24x48xbf16, #tpu.memory_space<vmem>>, vector<24x48xbf16>
    %cst_15 = arith.constant dense<0.000000e+00> : vector<8x48xf32>
    %31 = tpu.matmul %29, %30, %cst_15 {dimension_numbers = #tpu.dot_dimension_numbers<[1], [0], [0], [1], [0, 0, 1, 1], [], []>} : vector<8x24xbf16>, vector<24x48xbf16>, vector<8x48xf32> -> vector<8x48xf32>
    %c0_16 = arith.constant 0 : index
    %c0_17 = arith.constant 0 : index
    %32 = vector.load %arg5[%c0_16, %c0_17] : memref<48x32xf32, #tpu.memory_space<vmem>>, vector<48x32xf32>
    %cst_18 = arith.constant dense<0.000000e+00> : vector<8x32xf32>
    %33 = tpu.matmul %1, %32, %cst_18 {dimension_numbers = #tpu.dot_dimension_numbers<[1], [0], [0], [1], [0, 0, 1, 1], [], []>} : vector<8x48xf32>, vector<48x32xf32>, vector<8x32xf32> -> vector<8x32xf32>
    %c0_19 = arith.constant 0 : index
    %c0_20 = arith.constant 0 : index
    %34 = vector.load %arg9[%c0_19, %c0_20] : memref<1x32xf32, #tpu.memory_space<vmem>>, vector<1x32xf32>
    %c0_21 = arith.constant 0 : index
    %c0_22 = arith.constant 0 : index
    %35 = vector.load %arg10[%c0_21, %c0_22] : memref<1x32xf32, #tpu.memory_space<vmem>>, vector<1x32xf32>
    %cst_23 = arith.constant dense<0.000000e+00> : vector<8xf32>
    %36 = vector.multi_reduction <add>, %33, %cst_23 [1] : vector<8x32xf32> to vector<8xf32>
    %37 = vector.shape_cast %36 : vector<8xf32> to vector<8x1xf32>
    %cst_24 = arith.constant 3.200000e+01 : f32
    %38 = vector.broadcast %cst_24 : f32 to vector<8x1xf32>
    %39 = arith.divf %37, %38 : vector<8x1xf32>
    %40 = vector.broadcast %39 : vector<8x1xf32> to vector<8x32xf32>
    %41 = arith.subf %33, %40 : vector<8x32xf32>
    %42 = arith.mulf %41, %41 : vector<8x32xf32>
    %cst_25 = arith.constant dense<0.000000e+00> : vector<8xf32>
    %43 = vector.multi_reduction <add>, %42, %cst_25 [1] : vector<8x32xf32> to vector<8xf32>
    %44 = vector.shape_cast %43 : vector<8xf32> to vector<8x1xf32>
    %cst_26 = arith.constant 3.200000e+01 : f32
    %45 = vector.broadcast %cst_26 : f32 to vector<8x1xf32>
    %46 = arith.divf %44, %45 : vector<8x1xf32>
    %47 = vector.broadcast %39 : vector<8x1xf32> to vector<8x32xf32>
    %48 = arith.subf %33, %47 : vector<8x32xf32>
    %cst_27 = arith.constant 9.99999974E-6 : f32
    %49 = vector.broadcast %cst_27 : f32 to vector<8x1xf32>
    %50 = arith.addf %46, %49 : vector<8x1xf32>
    %51 = math.rsqrt %50 : vector<8x1xf32>
    %52 = vector.broadcast %51 : vector<8x1xf32> to vector<8x32xf32>
    %53 = arith.mulf %48, %52 : vector<8x32xf32>
    %54 = vector.broadcast %34 : vector<1x32xf32> to vector<8x32xf32>
    %55 = arith.mulf %53, %54 : vector<8x32xf32>
    %56 = vector.broadcast %35 : vector<1x32xf32> to vector<8x32xf32>
    %57 = arith.addf %55, %56 : vector<8x32xf32>
    %58 = arith.truncf %57 : vector<8x32xf32> to vector<8x32xbf16>
    %c0_28 = arith.constant 0 : index
    %c0_29 = arith.constant 0 : index
    %59 = vector.load %arg6[%c0_28, %c0_29] : memref<32x96xbf16, #tpu.memory_space<vmem>>, vector<32x96xbf16>
    %cst_30 = arith.constant dense<0.000000e+00> : vector<8x96xf32>
    %60 = tpu.matmul %58, %59, %cst_30 {dimension_numbers = #tpu.dot_dimension_numbers<[1], [0], [0], [1], [0, 0, 1, 1], [], []>} : vector<8x32xbf16>, vector<32x96xbf16>, vector<8x96xf32> -> vector<8x96xf32>
    %61 = vector.extract_strided_slice %60 {offsets = [0, 0], sizes = [8, 48], strides = [1, 1]} : vector<8x96xf32> to vector<8x48xf32>
    %62 = vector.extract_strided_slice %60 {offsets = [0, 48], sizes = [8, 48], strides = [1, 1]} : vector<8x96xf32> to vector<8x48xf32>
    %63 = vector.extract_strided_slice %31 {offsets = [0, 0], sizes = [8, 12], strides = [1, 1]} : vector<8x48xf32> to vector<8x12xf32>
    %64 = arith.truncf %63 : vector<8x12xf32> to vector<8x12xbf16>
    %c0_31 = arith.constant 0 : index
    %c0_32 = arith.constant 0 : index
    %c0_33 = arith.constant 0 : index
    %c0_34 = arith.constant 0 : index
    %65 = vector.load %arg11[%c0_31, %c0_32, %c0_33, %c0_34] : memref<1x4x8x12xbf16, #tpu.memory_space<vmem>>, vector<1x1x8x12xbf16>
    %66 = vector.shape_cast %65 : vector<1x1x8x12xbf16> to vector<8x12xbf16>
    %67 = vector.shape_cast %64 : vector<8x12xbf16> to vector<1x1x8x12xbf16>
    tpu.vector_store %arg11[%c0_31, %c0_32, %c0_33, %c0_34], %67 {strides = array<i32>} : memref<1x4x8x12xbf16, #tpu.memory_space<vmem>>, vector<1x1x8x12xbf16>,
    %68 = vector.extract_strided_slice %61 {offsets = [0, 0], sizes = [8, 12], strides = [1, 1]} : vector<8x48xf32> to vector<8x12xf32>
    %69 = arith.truncf %68 : vector<8x12xf32> to vector<8x12xbf16>
    %c0_35 = arith.constant 0 : index
    %c0_36 = arith.constant 0 : index
    %c0_37 = arith.constant 0 : index
    %c0_38 = arith.constant 0 : index
    %70 = vector.load %arg12[%c0_35, %c0_36, %c0_37, %c0_38] : memref<1x4x8x12xbf16, #tpu.memory_space<vmem>>, vector<1x1x8x12xbf16>
    %71 = vector.shape_cast %70 : vector<1x1x8x12xbf16> to vector<8x12xbf16>
    %72 = vector.shape_cast %69 : vector<8x12xbf16> to vector<1x1x8x12xbf16>
    tpu.vector_store %arg12[%c0_35, %c0_36, %c0_37, %c0_38], %72 {strides = array<i32>} : memref<1x4x8x12xbf16, #tpu.memory_space<vmem>>, vector<1x1x8x12xbf16>,
    %73 = vector.extract_strided_slice %62 {offsets = [0, 0], sizes = [8, 12], strides = [1, 1]} : vector<8x48xf32> to vector<8x12xf32>
    %74 = arith.truncf %73 : vector<8x12xf32> to vector<8x12xbf16>
    %c0_39 = arith.constant 0 : index
    %c0_40 = arith.constant 0 : index
    %c0_41 = arith.constant 0 : index
    %c0_42 = arith.constant 0 : index
    %75 = vector.load %arg13[%c0_39, %c0_40, %c0_41, %c0_42] : memref<1x4x8x12xbf16, #tpu.memory_space<vmem>>, vector<1x1x8x12xbf16>
    %76 = vector.shape_cast %75 : vector<1x1x8x12xbf16> to vector<8x12xbf16>
    %77 = vector.shape_cast %74 : vector<8x12xbf16> to vector<1x1x8x12xbf16>
    tpu.vector_store %arg13[%c0_39, %c0_40, %c0_41, %c0_42], %77 {strides = array<i32>} : memref<1x4x8x12xbf16, #tpu.memory_space<vmem>>, vector<1x1x8x12xbf16>,
    %78 = vector.extract_strided_slice %31 {offsets = [0, 12], sizes = [8, 12], strides = [1, 1]} : vector<8x48xf32> to vector<8x12xf32>
    %79 = arith.truncf %78 : vector<8x12xf32> to vector<8x12xbf16>
    %c0_43 = arith.constant 0 : index
    %c1 = arith.constant 1 : index
    %c0_44 = arith.constant 0 : index
    %c0_45 = arith.constant 0 : index
    %80 = vector.load %arg11[%c0_43, %c1, %c0_44, %c0_45] : memref<1x4x8x12xbf16, #tpu.memory_space<vmem>>, vector<1x1x8x12xbf16>
    %81 = vector.shape_cast %80 : vector<1x1x8x12xbf16> to vector<8x12xbf16>
    %82 = vector.shape_cast %79 : vector<8x12xbf16> to vector<1x1x8x12xbf16>
    tpu.vector_store %arg11[%c0_43, %c1, %c0_44, %c0_45], %82 {strides = array<i32>} : memref<1x4x8x12xbf16, #tpu.memory_space<vmem>>, vector<1x1x8x12xbf16>,
    %83 = vector.extract_strided_slice %61 {offsets = [0, 12], sizes = [8, 12], strides = [1, 1]} : vector<8x48xf32> to vector<8x12xf32>
    %84 = arith.truncf %83 : vector<8x12xf32> to vector<8x12xbf16>
    %c0_46 = arith.constant 0 : index
    %c1_47 = arith.constant 1 : index
    %c0_48 = arith.constant 0 : index
    %c0_49 = arith.constant 0 : index
    %85 = vector.load %arg12[%c0_46, %c1_47, %c0_48, %c0_49] : memref<1x4x8x12xbf16, #tpu.memory_space<vmem>>, vector<1x1x8x12xbf16>
    %86 = vector.shape_cast %85 : vector<1x1x8x12xbf16> to vector<8x12xbf16>
    %87 = vector.shape_cast %84 : vector<8x12xbf16> to vector<1x1x8x12xbf16>
    tpu.vector_store %arg12[%c0_46, %c1_47, %c0_48, %c0_49], %87 {strides = array<i32>} : memref<1x4x8x12xbf16, #tpu.memory_space<vmem>>, vector<1x1x8x12xbf16>,
    %88 = vector.extract_strided_slice %62 {offsets = [0, 12], sizes = [8, 12], strides = [1, 1]} : vector<8x48xf32> to vector<8x12xf32>
    %89 = arith.truncf %88 : vector<8x12xf32> to vector<8x12xbf16>
    %c0_50 = arith.constant 0 : index
    %c1_51 = arith.constant 1 : index
    %c0_52 = arith.constant 0 : index
    %c0_53 = arith.constant 0 : index
    %90 = vector.load %arg13[%c0_50, %c1_51, %c0_52, %c0_53] : memref<1x4x8x12xbf16, #tpu.memory_space<vmem>>, vector<1x1x8x12xbf16>
    %91 = vector.shape_cast %90 : vector<1x1x8x12xbf16> to vector<8x12xbf16>
    %92 = vector.shape_cast %89 : vector<8x12xbf16> to vector<1x1x8x12xbf16>
    tpu.vector_store %arg13[%c0_50, %c1_51, %c0_52, %c0_53], %92 {strides = array<i32>} : memref<1x4x8x12xbf16, #tpu.memory_space<vmem>>, vector<1x1x8x12xbf16>,
    %93 = vector.extract_strided_slice %31 {offsets = [0, 24], sizes = [8, 12], strides = [1, 1]} : vector<8x48xf32> to vector<8x12xf32>
    %94 = arith.truncf %93 : vector<8x12xf32> to vector<8x12xbf16>
    %c0_54 = arith.constant 0 : index
    %c2 = arith.constant 2 : index
    %c0_55 = arith.constant 0 : index
    %c0_56 = arith.constant 0 : index
    %95 = vector.load %arg11[%c0_54, %c2, %c0_55, %c0_56] : memref<1x4x8x12xbf16, #tpu.memory_space<vmem>>, vector<1x1x8x12xbf16>
    %96 = vector.shape_cast %95 : vector<1x1x8x12xbf16> to vector<8x12xbf16>
    %97 = vector.shape_cast %94 : vector<8x12xbf16> to vector<1x1x8x12xbf16>
    tpu.vector_store %arg11[%c0_54, %c2, %c0_55, %c0_56], %97 {strides = array<i32>} : memref<1x4x8x12xbf16, #tpu.memory_space<vmem>>, vector<1x1x8x12xbf16>,
    %98 = vector.extract_strided_slice %61 {offsets = [0, 24], sizes = [8, 12], strides = [1, 1]} : vector<8x48xf32> to vector<8x12xf32>
    %99 = arith.truncf %98 : vector<8x12xf32> to vector<8x12xbf16>
    %c0_57 = arith.constant 0 : index
    %c2_58 = arith.constant 2 : index
    %c0_59 = arith.constant 0 : index
    %c0_60 = arith.constant 0 : index
    %100 = vector.load %arg12[%c0_57, %c2_58, %c0_59, %c0_60] : memref<1x4x8x12xbf16, #tpu.memory_space<vmem>>, vector<1x1x8x12xbf16>
    %101 = vector.shape_cast %100 : vector<1x1x8x12xbf16> to vector<8x12xbf16>
    %102 = vector.shape_cast %99 : vector<8x12xbf16> to vector<1x1x8x12xbf16>
    tpu.vector_store %arg12[%c0_57, %c2_58, %c0_59, %c0_60], %102 {strides = array<i32>} : memref<1x4x8x12xbf16, #tpu.memory_space<vmem>>, vector<1x1x8x12xbf16>,
    %103 = vector.extract_strided_slice %62 {offsets = [0, 24], sizes = [8, 12], strides = [1, 1]} : vector<8x48xf32> to vector<8x12xf32>
    %104 = arith.truncf %103 : vector<8x12xf32> to vector<8x12xbf16>
    %c0_61 = arith.constant 0 : index
    %c2_62 = arith.constant 2 : index
    %c0_63 = arith.constant 0 : index
    %c0_64 = arith.constant 0 : index
    %105 = vector.load %arg13[%c0_61, %c2_62, %c0_63, %c0_64] : memref<1x4x8x12xbf16, #tpu.memory_space<vmem>>, vector<1x1x8x12xbf16>
    %106 = vector.shape_cast %105 : vector<1x1x8x12xbf16> to vector<8x12xbf16>
    %107 = vector.shape_cast %104 : vector<8x12xbf16> to vector<1x1x8x12xbf16>
    tpu.vector_store %arg13[%c0_61, %c2_62, %c0_63, %c0_64], %107 {strides = array<i32>} : memref<1x4x8x12xbf16, #tpu.memory_space<vmem>>, vector<1x1x8x12xbf16>,
    %108 = vector.extract_strided_slice %31 {offsets = [0, 36], sizes = [8, 12], strides = [1, 1]} : vector<8x48xf32> to vector<8x12xf32>
    %109 = arith.truncf %108 : vector<8x12xf32> to vector<8x12xbf16>
    %c0_65 = arith.constant 0 : index
    %c3 = arith.constant 3 : index
    %c0_66 = arith.constant 0 : index
    %c0_67 = arith.constant 0 : index
    %110 = vector.load %arg11[%c0_65, %c3, %c0_66, %c0_67] : memref<1x4x8x12xbf16, #tpu.memory_space<vmem>>, vector<1x1x8x12xbf16>
    %111 = vector.shape_cast %110 : vector<1x1x8x12xbf16> to vector<8x12xbf16>
    %112 = vector.shape_cast %109 : vector<8x12xbf16> to vector<1x1x8x12xbf16>
    tpu.vector_store %arg11[%c0_65, %c3, %c0_66, %c0_67], %112 {strides = array<i32>} : memref<1x4x8x12xbf16, #tpu.memory_space<vmem>>, vector<1x1x8x12xbf16>,
    %113 = vector.extract_strided_slice %61 {offsets = [0, 36], sizes = [8, 12], strides = [1, 1]} : vector<8x48xf32> to vector<8x12xf32>
    %114 = arith.truncf %113 : vector<8x12xf32> to vector<8x12xbf16>
    %c0_68 = arith.constant 0 : index
    %c3_69 = arith.constant 3 : index
    %c0_70 = arith.constant 0 : index
    %c0_71 = arith.constant 0 : index
    %115 = vector.load %arg12[%c0_68, %c3_69, %c0_70, %c0_71] : memref<1x4x8x12xbf16, #tpu.memory_space<vmem>>, vector<1x1x8x12xbf16>
    %116 = vector.shape_cast %115 : vector<1x1x8x12xbf16> to vector<8x12xbf16>
    %117 = vector.shape_cast %114 : vector<8x12xbf16> to vector<1x1x8x12xbf16>
    tpu.vector_store %arg12[%c0_68, %c3_69, %c0_70, %c0_71], %117 {strides = array<i32>} : memref<1x4x8x12xbf16, #tpu.memory_space<vmem>>, vector<1x1x8x12xbf16>,
    %118 = vector.extract_strided_slice %62 {offsets = [0, 36], sizes = [8, 12], strides = [1, 1]} : vector<8x48xf32> to vector<8x12xf32>
    %119 = arith.truncf %118 : vector<8x12xf32> to vector<8x12xbf16>
    %c0_72 = arith.constant 0 : index
    %c3_73 = arith.constant 3 : index
    %c0_74 = arith.constant 0 : index
    %c0_75 = arith.constant 0 : index
    %120 = vector.load %arg13[%c0_72, %c3_73, %c0_74, %c0_75] : memref<1x4x8x12xbf16, #tpu.memory_space<vmem>>, vector<1x1x8x12xbf16>
    %121 = vector.shape_cast %120 : vector<1x1x8x12xbf16> to vector<8x12xbf16>
    %122 = vector.shape_cast %119 : vector<8x12xbf16> to vector<1x1x8x12xbf16>
    tpu.vector_store %arg13[%c0_72, %c3_73, %c0_74, %c0_75], %122 {strides = array<i32>} : memref<1x4x8x12xbf16, #tpu.memory_space<vmem>>, vector<1x1x8x12xbf16>,
    %c0_76 = arith.constant 0 : index
    %c0_77 = arith.constant 0 : index
    %c0_78 = arith.constant 0 : index
    %123 = vector.load %arg14[%c0_76, %c0_77, %c0_78] : memref<1x8x32xf32, #tpu.memory_space<vmem>>, vector<1x8x32xf32>
    %124 = vector.shape_cast %123 : vector<1x8x32xf32> to vector<8x32xf32>
    %125 = vector.shape_cast %57 : vector<8x32xf32> to vector<1x8x32xf32>
    tpu.vector_store %arg14[%c0_76, %c0_77, %c0_78], %125 {strides = array<i32>} : memref<1x8x32xf32, #tpu.memory_space<vmem>>, vector<1x8x32xf32>,
    return
  }
  func.func @transform_0(%arg0: i32, %arg1: i32) -> (i32, i32, i32) {
    %c0_i32 = arith.constant 0 : i32
    %c0_i32_0 = arith.constant 0 : i32
    return %arg0, %arg1, %c0_i32 : i32, i32, i32
  }
  func.func @transform_1(%arg0: i32, %arg1: i32) -> (i32, i32) {
    %c0_i32 = arith.constant 0 : i32
    %c0_i32_0 = arith.constant 0 : i32
    %c0_i32_1 = arith.constant 0 : i32
    return %c0_i32, %c0_i32_0 : i32, i32
  }
  func.func @transform_2(%arg0: i32, %arg1: i32) -> (i32, i32) {
    %c0_i32 = arith.constant 0 : i32
    %c0_i32_0 = arith.constant 0 : i32
    %c0_i32_1 = arith.constant 0 : i32
    return %c0_i32, %c0_i32_0 : i32, i32
  }
  func.func @transform_3(%arg0: i32, %arg1: i32) -> (i32, i32) {
    %c0_i32 = arith.constant 0 : i32
    %c0_i32_0 = arith.constant 0 : i32
    %c0_i32_1 = arith.constant 0 : i32
    return %c0_i32, %c0_i32_0 : i32, i32
  }
  func.func @transform_4(%arg0: i32, %arg1: i32) -> (i32, i32) {
    %c0_i32 = arith.constant 0 : i32
    %c0_i32_0 = arith.constant 0 : i32
    %c0_i32_1 = arith.constant 0 : i32
    return %c0_i32, %c0_i32_0 : i32, i32
  }
  func.func @transform_5(%arg0: i32, %arg1: i32) -> (i32, i32) {
    %c0_i32 = arith.constant 0 : i32
    %c0_i32_0 = arith.constant 0 : i32
    %c0_i32_1 = arith.constant 0 : i32
    return %c0_i32, %c0_i32_0 : i32, i32
  }
  func.func @transform_6(%arg0: i32, %arg1: i32) -> (i32, i32) {
    %c0_i32 = arith.constant 0 : i32
    %c0_i32_0 = arith.constant 0 : i32
    %c0_i32_1 = arith.constant 0 : i32
    return %c0_i32, %c0_i32_0 : i32, i32
  }
  func.func @transform_7(%arg0: i32, %arg1: i32) -> (i32, i32) {
    %c0_i32 = arith.constant 0 : i32
    %c0_i32_0 = arith.constant 0 : i32
    %c0_i32_1 = arith.constant 0 : i32
    return %c0_i32, %c0_i32_0 : i32, i32
  }
  func.func @transform_8(%arg0: i32, %arg1: i32) -> (i32, i32) {
    %c0_i32 = arith.constant 0 : i32
    %c0_i32_0 = arith.constant 0 : i32
    %c0_i32_1 = arith.constant 0 : i32
    return %c0_i32, %c0_i32_0 : i32, i32
  }
  func.func @transform_9(%arg0: i32, %arg1: i32) -> (i32, i32, i32, i32) {
    %c0_i32 = arith.constant 0 : i32
    %c0_i32_0 = arith.constant 0 : i32
    %c0_i32_1 = arith.constant 0 : i32
    return %arg0, %c0_i32, %arg1, %c0_i32_0 : i32, i32, i32, i32
  }
  func.func @transform_10(%arg0: i32, %arg1: i32) -> (i32, i32, i32, i32) {
    %c0_i32 = arith.constant 0 : i32
    %c0_i32_0 = arith.constant 0 : i32
    %c0_i32_1 = arith.constant 0 : i32
    return %arg0, %c0_i32, %arg1, %c0_i32_0 : i32, i32, i32, i32
  }
  func.func @transform_11(%arg0: i32, %arg1: i32) -> (i32, i32, i32, i32) {
    %c0_i32 = arith.constant 0 : i32
    %c0_i32_0 = arith.constant 0 : i32
    %c0_i32_1 = arith.constant 0 : i32
    return %arg0, %c0_i32, %arg1, %c0_i32_0 : i32, i32, i32, i32
  }
  func.func @transform_12(%arg0: i32, %arg1: i32) -> (i32, i32, i32) {
    %c0_i32 = arith.constant 0 : i32
    %c0_i32_0 = arith.constant 0 : i32
    return %arg0, %arg1, %c0_i32 : i32, i32, i32
  }
}

</mosaic_0001>

<bundles_post_ra>
// kernel: tpu_custom_call.1
= control target key start
LH: loop header
LB: loop body
LE: loop exit
PB: predicated region body
PF: predicated region fallthrough
CT: control target
= control target key end

     0   :  { %s2756_s0 = inlined_call_operand.hbm [shape: f32[2,8,48], index: 0, kind: input, shape index: {}]   ;;  %s2757_s1 = inlined_call_operand.hbm [shape: bf16[48,24], index: 1, kind: input, shape index: {}]   ;;  %s2758_s2 = inlined_call_operand.hbm [shape: bf16[24,48], index: 2, kind: input, shape index: {}]   ;;  %s2759_s3 = inlined_call_operand.hbm [shape: f32[48,32], index: 3, kind: input, shape index: {}]   ;;  %s2760_s4 = inlined_call_operand.hbm [shape: bf16[32,96], index: 4, kind: input, shape index: {}]   ;;  %s2761_s5 = inlined_call_operand.hbm [shape: f32[1,24], index: 5, kind: input, shape index: {}]   ;;  %s2762_s6 = inlined_call_operand.hbm [shape: f32[1,24], index: 6, kind: input, shape index: {}]   ;;  %s2763_s7 = inlined_call_operand.hbm [shape: f32[1,32], index: 7, kind: input, shape index: {}]   ;;  %s2764_s8 = inlined_call_operand.hbm [shape: f32[1,32], index: 8, kind: input, shape index: {}]   ;;  %s2765_s9 = inlined_call_operand.hbm [shape: bf16[2,4,8,12], index: 9, kind: output, shape index: {0}]   ;;  %s2766_s10 = inlined_call_operand.hbm [shape: bf16[2,4,8,12], index: 10, kind: output, shape index: {1}]   ;;  %s2767_s11 = inlined_call_operand.hbm [shape: bf16[2,4,8,12], index: 11, kind: output, shape index: {2}]   ;;  %s2768_s12 = inlined_call_operand.hbm [shape: f32[2,8,32], index: 12, kind: output, shape index: {3}]  }
   0x1   :  { %2782 = sst [smem:[#allocation32_spill]] %s2756_s0 }
   0x2   :  { %2783 = sst [smem:[#allocation33_spill]] %s2757_s1 }
   0x3   :  { %2784 = sst [smem:[#allocation34_spill]] %s2758_s2 }
   0x4   :  { %2785 = sst [smem:[#allocation35_spill]] %s2759_s3 }
   0x5   :  { %2786 = sst [smem:[#allocation36_spill]] %s2760_s4 }
   0x6   :  { %2787 = sst [smem:[#allocation37_spill]] %s2761_s5 }
   0x7   :  { %2788 = sst [smem:[#allocation38_spill]] %s2762_s6 }
   0x8   :  { %2789 = sst [smem:[#allocation39_spill]] %s2765_s9 }
   0x9   :  { %2790 = sst [smem:[#allocation40_spill]] %s2766_s10 }
   0xa   :  { %2791 = sst [smem:[#allocation41_spill]] %s2767_s11 }
   0xb   :  { %2792 = sst [smem:[#allocation42_spill]] %s2768_s12 }
   0xc   :  { %18 = vsyncpa [#allocation3], 0 }
   0xd   :  { %20 = vsyncpa [#allocation3 + $0x1], 0 }
   0xe   :  { %21 = vsyncpa [#allocation6], 0 }
   0xf   :  { %22 = vsyncpa [#allocation9], 0 }
  0x10   :  { %23 = vsyncpa [#allocation12], 0 }
  0x11   :  { %24 = vsyncpa [#allocation15], 0 }
  0x12   :  { %25 = vsyncpa [#allocation4], 0 }
  0x13   :  { %27 = vsyncpa [#allocation4 + $0x1], 0 }
  0x14   :  { %28 = vsyncpa [#allocation19], 0 }
  0x15   :  { %30 = vsyncpa [#allocation19 + $0x1], 0 }
  0x16   :  { %31 = vsyncpa [#allocation22], 0 }
  0x17   :  { %33 = vsyncpa [#allocation22 + $0x1], 0  ;;  %s2181_s21 = smov 0   ;;  %s2183_s22 = smov 0  }
  0x18   :  { %s2185_s23 = smov 0   ;;  %s2187_s24 = smov 0  }
  0x19   :  { %s2189_s25 = smov 0   ;;  %s2191_s26 = smov 0  }
  0x1a LB: > { %2793 = sst [smem:[#allocation31_spill]] %s2077_s24  ;;  %s2212_s27 = sadd.s32 4294967295, %s2085_s26   ;;  %s2085_s26 = sphi %s2191_s26, %s39_s26   ;;  %s2081_s25 = sphi %s2189_s25, %s2834_s25   ;;  %s2077_s24 = sphi %s2187_s24, %s2833_s24   ;;  %s2073_s23 = sphi %s2185_s23, %s2832_s23   ;;  %s2069_s22 = sphi %s2183_s22, %s2831_s22   ;;  %s2065_s21 = sphi %s2181_s21, %s2830_s21  }
  0x1b   : > { %p1319_p0 = scmp.ge.s32.totalorder %s2085_s26, 1  ;;  %p2778_p1 = scmp.eq.s32.totalorder %s2212_s27, 0 }
  0x1c   : > { %p364_p2 = scmp.lt.s32.totalorder %s2085_s26, 3  ;;  %s2087_s29 = smov [#allocation5]  }
  0x1d   : > { %s376_s30 = sshll.u32 %s2087_s29, 4  ;;  %s2088_s14 = smov [#allocation8]   ;;  %s2221_s30 = int_to_ptr.vmem [resolvable:$true] %s376_s30 }
  0x1e   : > { %p2217_p3 = pnand %p1319_p0, %p364_p2  ;;  %s402_s15 = sshll.u32 %s2088_s14, 4  ;;  %s2232_s15 = int_to_ptr.vmem [resolvable:$true] %s402_s15 }
  0x1f   : > { %s2796_s1 = sld [smem:[#allocation33_spill]] }
  0x20   : > { %s2794_s28 = scalar_select %p2217_p3, 1, 0 }
  0x21   : > { %p1498_p4 = pneg %p2217_p3 }
  0x23   : > { %p2228_p6 = pnand %p1498_p4, %p2778_p1 }
  0x25   : > { %s1641_s18 = scalar_lea.hbm %s2796_s1, 384  ;;  %p2242_p8 = pneg %p2228_p6 }
  0x26   : > { %p1642_p7 = scmp.ne.s32.totalorder %s2796_s1, %s1641_s18  ;;  %p1648_p11 = scmp.lt.u32.totalorder %s1641_s18, %s2796_s1 }
  0x28   : > { %p1644_p9 = pnand %p2242_p8, %p1642_p7 }
  0x2a   : > { %p1645_p10 = pneg %p1644_p9 }
  0x2c   : > { %p1650_p12 = pnand %p1648_p11, %p1645_p10 }
  0x2e   : > { %1653 = shalt.err (!%p1650_p12)
}
  0x2f   : > { %s1654_s16 = scalar_lea.vmem %s2221_s30, 384  ;;  %p1662_p4 = scmp.lt.s32.totalorder %s2221_s30, %s2221_s30 }
  0x30   : > { %p1655_p13 = scmp.ne.s32.totalorder %s2221_s30, %s1654_s16  ;;  %p1663_p5 = scmp.lt.s32.totalorder %s1654_s16, %s1654_s16 }
  0x32   : > { %p1657_p0 = pnand %p1655_p13, %p2242_p8  ;;  %p1664_p7 = por %p1663_p5, %p1662_p4 }
  0x34   : > { %p1658_p2 = pneg %p1657_p0 }
  0x36   : > { %p1665_p9 = pnand %p1664_p7, %p1658_p2 }
  0x38   : > { %1668 = shalt.err (!%p1665_p9)
}
  0x39   : > { %s2774_s17 = smov 64   ;;  %s2776_s11 = smov 4  }
  0x3a   : > { %1501 = dma.hbm_to_vmem [thread:$0]  (!%p2228_p6), %s2796_s1, 384, %s2221_s30, [#allocation6], %s2774_s17, %s2774_s17, %s2776_s11  }
  0x3b   : > { %s2798_s3 = sld [smem:[#allocation35_spill]] }
  0x41   : > { %s1669_s16 = scalar_lea.hbm %s2798_s3, 768 }
  0x42   : > { %p1670_p5 = scmp.ne.s32.totalorder %s2798_s3, %s1669_s16  ;;  %p1676_p12 = scmp.lt.u32.totalorder %s1669_s16, %s2798_s3 }
  0x44   : > { %p1672_p10 = pnand %p1670_p5, %p2242_p8 }
  0x46   : > { %p1673_p11 = pneg %p1672_p10 }
  0x48   : > { %p1678_p13 = pnand %p1676_p12, %p1673_p11 }
  0x4a   : > { %1681 = shalt.err (!%p1678_p13)
}
  0x4b   : > { %s1682_s30 = scalar_lea.vmem %s2232_s15, 768  ;;  %p1690_p7 = scmp.lt.s32.totalorder %s2232_s15, %s2232_s15 }
  0x4c   : > { %p1683_p0 = scmp.ne.s32.totalorder %s2232_s15, %s1682_s30  ;;  %p1691_p9 = scmp.lt.s32.totalorder %s1682_s30, %s1682_s30 }
  0x4e   : > { %p1685_p2 = pnand %p1683_p0, %p2242_p8  ;;  %p1692_p5 = por %p1691_p9, %p1690_p7 }
  0x50   : > { %p1686_p4 = pneg %p1685_p2 }
  0x52   : > { %p1693_p10 = pnand %p1692_p5, %p1686_p4 }
  0x54   : > { %1696 = shalt.err (!%p1693_p10)
}
  0x55   : > { %s2091_s9 = smov 128   ;;  %s2092_s10 = smov 8  }
  0x56   : > { %1507 = dma.hbm_to_vmem [thread:$0]  (!%p2228_p6), %s2798_s3, 768, %s2232_s15, [#allocation9], %s2091_s9, %s2091_s9, %s2092_s10  }
  0x57   : > { %s2093_s18 = smov [#allocation11]   ;;  %s2094_s20 = smov [#allocation14]  }
  0x58   : > { %s429_s19 = sshll.u32 %s2093_s18, 4  ;;  %s451_s14 = sshll.u32 %s2094_s20, 4  ;;  %s430_s19 = int_to_ptr.vmem [resolvable:$true] %s429_s19  ;;  %s2289_s14 = int_to_ptr.vmem [resolvable:$true] %s451_s14 }
  0x59   : > { %s2799_s5 = sld [smem:[#allocation37_spill]] }
  0x5f   : > { %s1697_s17 = scalar_lea.hbm %s2799_s5, 16 }
  0x60   : > { %p1698_p11 = scmp.ne.s32.totalorder %s2799_s5, %s1697_s17  ;;  %p1704_p0 = scmp.lt.u32.totalorder %s1697_s17, %s2799_s5 }
  0x62   : > { %p1700_p12 = pnand %p1698_p11, %p2242_p8 }
  0x64   : > { %p1701_p13 = pneg %p1700_p12 }
  0x66   : > { %p1706_p2 = pnand %p1704_p0, %p1701_p13 }
  0x68   : > { %1709 = shalt.err (!%p1706_p2)
}
  0x69   : > { %s1710_s9 = scalar_lea.vmem %s430_s19, 16  ;;  %s1717_s10 = scalar_lea.vmem %s430_s19, 32 }
  0x6a   : > { %p1711_p4 = scmp.ne.s32.totalorder %s430_s19, %s1710_s9  ;;  %p1718_p5 = scmp.lt.s32.totalorder %s430_s19, %s430_s19 }
  0x6b   : > { %p1719_p10 = scmp.lt.s32.totalorder %s1717_s10, %s1710_s9 }
  0x6c   : > { %p1713_p7 = pnand %p1711_p4, %p2242_p8 }
  0x6d   : > { %p1720_p1 = por %p1719_p10, %p1718_p5 }
  0x6e   : > { %p1714_p9 = pneg %p1713_p7 }
  0x70   : > { %p1721_p3 = pnand %p1720_p1, %p1714_p9 }
  0x72   : > { %1724 = shalt.err (!%p1721_p3)
}
  0x73   : > { %1513 = dma.hbm_to_vmem [thread:$0]  (!%p2228_p6), %s2799_s5, 16, %s430_s19, [#allocation12]  }
  0x74   : > { %s1725_s18 = scalar_lea.hbm %s2763_s7, 16 }
  0x75   : > { %p1726_p11 = scmp.ne.s32.totalorder %s2763_s7, %s1725_s18  ;;  %p1732_p1 = scmp.lt.u32.totalorder %s1725_s18, %s2763_s7 }
  0x77   : > { %p1728_p12 = pnand %p1726_p11, %p2242_p8 }
  0x79   : > { %p1729_p13 = pneg %p1728_p12 }
  0x7b   : > { %p1734_p3 = pnand %p1732_p1, %p1729_p13 }
  0x7d   : > { %1737 = shalt.err (!%p1734_p3)
}
  0x7e   : > { %s1738_s19 = scalar_lea.vmem %s2289_s14, 16  ;;  %s1745_s15 = scalar_lea.vmem %s2289_s14, 32 }
  0x7f   : > { %p1739_p0 = scmp.ne.s32.totalorder %s2289_s14, %s1738_s19  ;;  %p1746_p7 = scmp.lt.s32.totalorder %s2289_s14, %s2289_s14 }
  0x80   : > { %p1747_p9 = scmp.lt.s32.totalorder %s1745_s15, %s1738_s19 }
  0x81   : > { %p1741_p2 = pnand %p1739_p0, %p2242_p8 }
  0x82   : > { %p1748_p5 = por %p1747_p9, %p1746_p7 }
  0x83   : > { %p1742_p4 = pneg %p1741_p2 }
  0x85   : > { %p1749_p10 = pnand %p1748_p5, %p1742_p4 }
  0x87   : > { %1752 = shalt.err (!%p1749_p10)
}
  0x88   : > { %1519 = dma.hbm_to_vmem [thread:$0]  (!%p2228_p6), %s2763_s7, 16, %s2289_s14, [#allocation15]  }
  0x89   : > { %s2095_s1 = smov [#allocation7]   ;;  %s2096_s17 = smov [#allocation10]  }
  0x8a   : > { %s389_s11 = sshll.u32 %s2095_s1, 4  ;;  %s415_s24 = sshll.u32 %s2096_s17, 4  ;;  %s390_s11 = int_to_ptr.vmem [resolvable:$true] %s389_s11  ;;  %s2333_s24 = int_to_ptr.vmem [resolvable:$true] %s415_s24 }
  0x8b   : > { %s2800_s2 = sld [smem:[#allocation34_spill]] }
  0x91   : > { %s1753_s16 = scalar_lea.hbm %s2800_s2, 192 }
  0x92   : > { %p1754_p11 = scmp.ne.s32.totalorder %s2800_s2, %s1753_s16  ;;  %p1760_p1 = scmp.lt.u32.totalorder %s1753_s16, %s2800_s2 }
  0x94   : > { %p1756_p12 = pnand %p1754_p11, %p2242_p8 }
  0x96   : > { %p1757_p13 = pneg %p1756_p12 }
  0x98   : > { %p1762_p3 = pnand %p1760_p1, %p1757_p13 }
  0x9a   : > { %1765 = shalt.err (!%p1762_p3)
}
  0x9b   : > { %s1766_s15 = scalar_lea.vmem %s390_s11, 192  ;;  %p1774_p7 = scmp.lt.s32.totalorder %s390_s11, %s390_s11 }
  0x9c   : > { %p1767_p0 = scmp.ne.s32.totalorder %s390_s11, %s1766_s15  ;;  %p1775_p9 = scmp.lt.s32.totalorder %s1766_s15, %s1766_s15 }
  0x9e   : > { %p1769_p2 = pnand %p1767_p0, %p2242_p8  ;;  %p1776_p5 = por %p1775_p9, %p1774_p7 }
  0xa0   : > { %p1770_p4 = pneg %p1769_p2 }
  0xa2   : > { %p1777_p10 = pnand %p1776_p5, %p1770_p4 }
  0xa4   : > { %1780 = shalt.err (!%p1777_p10)
}
  0xa5   : > { %s2801_s9 = smov 4   ;;  %s2802_s10 = smov 64  }
  0xa6   : > { %1504 = dma.hbm_to_vmem [thread:$0]  (!%p2228_p6), %s2800_s2, 192, %s390_s11, [#allocation6], %s2802_s10, %s2802_s10, %s2801_s9  }
  0xa7   : > { %s2803_s4 = sld [smem:[#allocation36_spill]] }
  0xad   : > { %s1781_s16 = scalar_lea.hbm %s2803_s4, 256 }
  0xae   : > { %p1782_p11 = scmp.ne.s32.totalorder %s2803_s4, %s1781_s16  ;;  %p1788_p1 = scmp.lt.u32.totalorder %s1781_s16, %s2803_s4 }
  0xb0   : > { %p1784_p12 = pnand %p1782_p11, %p2242_p8 }
  0xb2   : > { %p1785_p13 = pneg %p1784_p12 }
  0xb4   : > { %p1790_p3 = pnand %p1788_p1, %p1785_p13 }
  0xb6   : > { %1793 = shalt.err (!%p1790_p3)
}
  0xb7   : > { %s1794_s11 = scalar_lea.vmem %s2333_s24, 256  ;;  %p1802_p7 = scmp.lt.s32.totalorder %s2333_s24, %s2333_s24 }
  0xb8   : > { %p1795_p0 = scmp.ne.s32.totalorder %s2333_s24, %s1794_s11  ;;  %p1803_p9 = scmp.lt.s32.totalorder %s1794_s11, %s1794_s11 }
  0xba   : > { %p1797_p2 = pnand %p1795_p0, %p2242_p8  ;;  %p1804_p5 = por %p1803_p9, %p1802_p7 }
  0xbc   : > { %p1798_p4 = pneg %p1797_p2 }
  0xbe   : > { %p1805_p10 = pnand %p1804_p5, %p1798_p4 }
  0xc0   : > { %1808 = shalt.err (!%p1805_p10)
}
  0xc1   : > { %1510 = dma.hbm_to_vmem [thread:$0]  (!%p2228_p6), %s2803_s4, 256, %s2333_s24, [#allocation9], %s2802_s10, %s2802_s10, %s2801_s9  }
  0xc2   : > { %s2097_s17 = smov [#allocation13]   ;;  %s2098_s20 = smov [#allocation16]  }
  0xc3   : > { %s440_s18 = sshll.u32 %s2097_s17, 4  ;;  %s462_s16 = sshll.u32 %s2098_s20, 4  ;;  %s441_s18 = int_to_ptr.vmem [resolvable:$true] %s440_s18  ;;  %s2382_s16 = int_to_ptr.vmem [resolvable:$true] %s462_s16 }
  0xc4   : > { %s2804_s6 = sld [smem:[#allocation38_spill]] }
  0xca   : > { %s1809_s19 = scalar_lea.hbm %s2804_s6, 16 }
  0xcb   : > { %p1810_p11 = scmp.ne.s32.totalorder %s2804_s6, %s1809_s19  ;;  %p1816_p1 = scmp.lt.u32.totalorder %s1809_s19, %s2804_s6 }
  0xcd   : > { %p1812_p12 = pnand %p1810_p11, %p2242_p8 }
  0xcf   : > { %p1813_p13 = pneg %p1812_p12 }
  0xd1   : > { %p1818_p3 = pnand %p1816_p1, %p1813_p13 }
  0xd3   : > { %1821 = shalt.err (!%p1818_p3)
}
  0xd4   : > { %s1822_s9 = scalar_lea.vmem %s441_s18, 16  ;;  %s1829_s10 = scalar_lea.vmem %s441_s18, 32 }
  0xd5   : > { %p1823_p0 = scmp.ne.s32.totalorder %s441_s18, %s1822_s9  ;;  %p1830_p7 = scmp.lt.s32.totalorder %s441_s18, %s441_s18 }
  0xd6   : > { %p1831_p9 = scmp.lt.s32.totalorder %s1829_s10, %s1822_s9 }
  0xd7   : > { %p1825_p2 = pnand %p1823_p0, %p2242_p8 }
  0xd8   : > { %p1832_p5 = por %p1831_p9, %p1830_p7 }
  0xd9   : > { %p1826_p4 = pneg %p1825_p2 }
  0xdb   : > { %p1833_p10 = pnand %p1832_p5, %p1826_p4 }
  0xdd   : > { %1836 = shalt.err (!%p1833_p10)
}
  0xde   : > { %1516 = dma.hbm_to_vmem [thread:$0]  (!%p2228_p6), %s2804_s6, 16, %s441_s18, [#allocation12]  }
  0xdf   : > { %s1837_s12 = scalar_lea.hbm %s2764_s8, 16 }
  0xe0   : > { %p1838_p11 = scmp.ne.s32.totalorder %s2764_s8, %s1837_s12  ;;  %p1844_p1 = scmp.lt.u32.totalorder %s1837_s12, %s2764_s8 }
  0xe2   : > { %p1840_p12 = pnand %p1838_p11, %p2242_p8 }
  0xe4   : > { %p1841_p13 = pneg %p1840_p12 }
  0xe6   : > { %p1846_p3 = pnand %p1844_p1, %p1841_p13 }
  0xe8   : > { %1849 = shalt.err (!%p1846_p3)
}
  0xe9   : > { %s1850_s18 = scalar_lea.vmem %s2382_s16, 16  ;;  %s1857_s24 = scalar_lea.vmem %s2382_s16, 32 }
  0xea   : > { %p1851_p0 = scmp.ne.s32.totalorder %s2382_s16, %s1850_s18  ;;  %p1858_p7 = scmp.lt.s32.totalorder %s2382_s16, %s2382_s16 }
  0xeb   : > { %p1859_p9 = scmp.lt.s32.totalorder %s1857_s24, %s1850_s18 }
  0xec   : > { %p1853_p2 = pnand %p1851_p0, %p2242_p8 }
  0xed   : > { %p1860_p5 = por %p1859_p9, %p1858_p7 }
  0xee   : > { %p1854_p4 = pneg %p1853_p2 }
  0xf0   : > { %p1861_p10 = pnand %p1860_p5, %p1854_p4 }
  0xf2   : > { %1864 = shalt.err (!%p1861_p10)
}
  0xf3   : > { %1522 = dma.hbm_to_vmem [thread:$0]  (!%p2228_p6), %s2764_s8, 16, %s2382_s16, [#allocation15]  }
  0xf4   : > { %s2780_s29 = sadd.s32 4294967294, %s2085_s26   ;;  %s51_s13 = sadd.s32 1, %s2081_s25 }
  0xf5   : > { %p53_p8 = scmp.ge.s32.totalorder %s51_s13, 2  ;;  %s60_s1 = sadd.s32 1, %s2073_s23 }
  0xf6   : > { %p67_p11 = scmp.ne.s32.totalorder %s2073_s23, %s2069_s22  ;;  %p68_p12 = scmp.eq.s32.totalorder %s2085_s26, 0 }
  0xf7   : > { %s2836_s13 = smov (%p53_p8, %s51_s13), 0  ;;  %p73_p1 = scmp.ne.s32.totalorder %s2069_s22, %s2065_s21 }
  0xf8   : > { %p2434_p13 = por %p68_p12, %p67_p11  ;;  %s55_s16 = ssub.s32 %s2081_s25, %s2836_s13 }
  0xf9   : > { %p267_p6 = scmp.eq.s32.totalorder %s2212_s27, 1  ;;  %p58_p3 = scmp.eq.s32.totalorder %s55_s16, 0 }
  0xfa   : > { %p2806_p0 = scmp.eq.s32.totalorder %s2212_s27, 0  ;;  %p273_p7 = scmp.eq.s32.totalorder %s2780_s29, 1 }
  0xfb   : > { %p2449_p4 = por %p267_p6, %p67_p11  ;;  %p1548_p5 = scmp.lt.s32.totalorder %s2085_s26, 2 }
  0xfc   : > { %p2445_p2 = por %p2806_p0, %p73_p1  ;;  %p2458_p9 = por %p273_p7, %p73_p1 }
  0xfd   : > { %s2808_s30 = scalar_select %p2449_p4, 1, 0 }
  0xfe   : > { %s2456_s12 = scalar_select %p58_p3, %s2073_s23, %s60_s1  }
  0xff   : > { %s2809_s19 = scalar_select %p2458_p9, 1, 0 }
 0x100   : > { %s473_s14 = sand.u32 1, %s2073_s23   ;;  %s1330_s11 = sshll.u32 %s2081_s25, 7 }
 0x101   : > { %s1329_s15 = sshll.u32 %s473_s14, 3  ;;  %s2810_s0 = sld [smem:[#allocation32_spill]] }
 0x102   : > { %s477_s10 = scalar_lea.vmem [#allocation2], %s1329_s15  ;;  %p2472_p10 = pnand %p1548_p5, %p2434_p13 }
 0x103   : > { %s485_s1 = sshll.u32 %s477_s10, 4  ;;  %s474_s29 = scalar_lea.sflag [#allocation3], %s473_s14  ;;  %s2476_s1 = int_to_ptr.vmem [resolvable:$true] %s485_s1 }
 0x104   : > { %p1867_p11 = pneg %p2472_p10 }
 0x107   : > { %s2468_s9 = scalar_lea.hbm %s2810_s0, %s1330_s11  ;;  %s1870_s17 = scalar_lea.hbm %s2810_s0, 256 }
 0x108   : > { %s1865_s2 = scalar_lea.hbm %s2468_s9, 128  ;;  %p1871_p13 = scmp.lt.u32.totalorder %s2468_s9, %s2810_s0 }
 0x109   : > { %p1866_p8 = scmp.ne.s32.totalorder %s2468_s9, %s1865_s2  ;;  %p1872_p6 = scmp.lt.u32.totalorder %s1870_s17, %s1865_s2 }
 0x10a   : > { %p1874_p0 = scmp.lt.u32.totalorder %s1865_s2, %s2468_s9 }
 0x10b   : > { %p1868_p12 = pnand %p1867_p11, %p1866_p8  ;;  %p1873_p3 = por %p1872_p6, %p1871_p13 }
 0x10d   : > { %p1869_p1 = pneg %p1868_p12  ;;  %p1875_p7 = por %p1874_p0, %p1873_p3 }
 0x10f   : > { %p1876_p5 = pnand %p1875_p7, %p1869_p1 }
 0x111   : > { %1879 = shalt.err (!%p1876_p5)
}
 0x112   : > { %s1880_s14 = scalar_lea.vmem %s2476_s1, 128  ;;  %s2099_s10 = smov [#allocation2]  }
 0x113   : > { %p1881_p8 = scmp.ne.s32.totalorder %s2476_s1, %s1880_s14  ;;  %s1885_s11 = sshll.u32 %s2099_s10, 4  ;;  %s1886_s11 = int_to_ptr.vmem [resolvable:$false] %s1885_s11 }
 0x114   : > { %s1887_s15 = scalar_lea.vmem %s1886_s11, 256  ;;  %p1888_p4 = scmp.lt.s32.totalorder %s2476_s1, %s1886_s11 }
 0x115   : > { %p1883_p12 = pnand %p1881_p8, %p1867_p11  ;;  %p1889_p13 = scmp.lt.s32.totalorder %s1887_s15, %s1880_s14 }
 0x117   : > { %p1884_p9 = pneg %p1883_p12  ;;  %p1890_p6 = por %p1889_p13, %p1888_p4 }
 0x119   : > { %p1891_p3 = pnand %p1890_p6, %p1884_p9 }
 0x11b   : > { %1894 = shalt.err (!%p1891_p3)
}
 0x11c   : > { %1526 = dma.hbm_to_vmem [thread:$0]  (!%p2472_p10), %s2468_s9, 128, %s2476_s1, %s474_s29  }
 0x11d   : > { %p2812_p1 = scmp.ne.s32.totalorder %s2794_s28, 0 }
 0x11e   : > { %s2506_s2 = sand.u32 (!%p2812_p1), 1, %s2069_s22  }
 0x11f   : > { %494 = sbr.rel (%p2812_p1) target bundleno = 1784 (0x6f8), region = 56  ;;  %s1332_s17 = sshll.u32 (!%p2812_p1), %s2506_s2, 3 }
 0x120   : > { %s497_s18 = scalar_lea.sflag (!%p2812_p1), [#allocation3], %s2506_s2  ;;  %s500_s24 = scalar_lea.vmem (!%p2812_p1), [#allocation2], %s1332_s17 }
 0x126   : > { %2032 = dma.done.wait (%p2445_p2), %s497_s18, 128  }
 0x127   : > { %2034 = vsyncadd (%p2445_p2), %s497_s18, 4294967168  ;;  %p2813_p4 = scmp.eq.s32.totalorder %s2212_s27, 0 }
 0x129   : > { %2036 = dma.done.wait (%p2813_p4), [#allocation6], 576   ;;  %p2814_p9 = pmov %p2813_p4 }
 0x12a   : > { %p2815_p10 = pmov %p2813_p4 }
 0x12b   : > { %2038 = vsyncadd (%p2814_p9), [#allocation6], 4294966720 }
 0x12c   : > { %2040 = dma.done.wait (%p2815_p10), [#allocation9], 1024   ;;  %p2816_p11 = pmov %p2813_p4 }
 0x12d   : > { %p2817_p0 = pmov %p2813_p4 }
 0x12e   : > { %2042 = vsyncadd (%p2816_p11), [#allocation9], 4294966272 }
 0x12f   : > { %2044 = dma.done.wait (%p2817_p0), [#allocation12], 32   ;;  %p2818_p7 = pmov %p2817_p0 }
 0x130   : > { %p2819_p2 = pmov %p2817_p0 }
 0x131   : > { %2046 = vsyncadd (%p2818_p7), [#allocation12], 4294967264 }
 0x132   : > { %2048 = dma.done.wait (%p2819_p2), [#allocation15], 32   ;;  %p2820_p5 = pmov %p2817_p0 }
 0x133   : > { %v2100_v0 = vmov 0.0   ;;  %vm2101_vm0 = vmmov 0   ;;  %v1630_v1 = vld [vmem:[#allocation5] sm:$0xff]   ;;  %v1631_v2 = vld [vmem:[#allocation5 + $0x8] sm:$0xff]   ;;  %v1632_v3 = vld [vmem:[#allocation5 + $0x10] sm:$0xff]   ;;  %vm615_vm1 = vcmask 392192  }
 0x134   : > { %2050 = vsyncadd (%p2820_p5), [#allocation15], 4294967264  ;;  %1406 = vmatprep.subr.bf16.mxu0 %v2100_v0  ;;  %1412 = vmatprep.mubr.msk.bf16.mxu0 %vm2101_vm0, %v2100_v0  ;;  %v589_v4 = vld [vmem:[%s500_s24] sm:$0xff]  ;;  %vm661_vm2 = vcmask 195584   ;;  %v1634_v17 = vld [vmem:[#allocation7 + $0x8] ss:$0 sps:$4 sm:$0xff]  }
 0x135   : > { %1416 = vmatprep.subr.bf16.mxu1 %v2100_v0  ;;  %1420 = vmatprep.mubr.msk.bf16.mxu1 %vm2101_vm0, %v2100_v0  ;;  %v590_v5 = vpack.c.bf16 %v589_v4, %v589_v4  ;;  %v1633_v16 = vld [vmem:[#allocation7] sm:$0xff]   ;;  %vm706_vm3 = vcmask 1043456   ;;  %v2102_v19 = vmov 0.0|0.0   ;;  %v1349_v24 = vld [vmem:[#allocation11] ss:$0 sm:$0xff]  ;;  %v751_v29 = vld [vmem:[#allocation8 + $0x8] sm:$0xff] }
 0x136   : > { %1407 = vmatpush3.bf16.msra.mxu0 %v1630_v1  ;;  %1417 = vmatpush3.bf16.msra.mxu1 %v1633_v16  ;;  %v708_v18 = vsel %vm706_vm3, %v1634_v17, 0  ;;  %v1350_v26 = vld [vmem:[#allocation13] ss:$0 sm:$0xff]  ;;  %v752_v33 = vld [vmem:[#allocation8 + $0x10] sm:$0xff]  ;;  %v753_v34 = vld [vmem:[#allocation8 + $0x18] sm:$0xff]  ;;  %s2552_s28 = sshll.u32 %s2506_s2, 4 }
 0x137   : > { %1408 = vmatprep.subr.bf16.mxu0 %v2100_v0  ;;  %1418 = vmatprep.subr.bf16.mxu1 %v2100_v0  ;;  %v750_v28 = vld [vmem:[#allocation8] sm:$0xff]  ;;  %v1451_v35 = vpack.c.bf16 %v753_v34, %v752_v33  ;;  %v755_v37 = vld [vmem:[#allocation8 + $0x28] sm:$0xff]  ;;  %vm921_vm4 = vcmask 93184   ;;  %s2555_s29 = scalar_lea.vmem [#allocation17], %s2552_s28  ;;  %s2103_s20 = smov 116   ;;  %vm831_vm5 = vcmask 261120  }
 0x138   : > { %v1448_v31 = vpack.c.bf16 %v751_v29, %v750_v28  ;;  %v754_v36 = vld [vmem:[#allocation8 + $0x20] sm:$0xff]  ;;  %s2104_s9 = smov 104   ;;  %v1635_v54 = vld [vmem:[#allocation10] sm:$0xff]   ;;  %v1636_v55 = vld [vmem:[#allocation10 + $0x8] sm:$0xff]   ;;  %s587_s1 = scalar_lea.vmem [#allocation21], %s1332_s17 }
 0x139   : > { %v1454_v38 = vpack.c.bf16 %v755_v37, %v754_v36  ;;  %v1355_v60 = vld [vmem:[#allocation14] ss:$0 sm:$0xff]  ;;  %v1356_v62 = vld [vmem:[#allocation16] ss:$0 sm:$0xff]  ;;  %s2821_s16 = sld [smem:[#allocation31_spill]]  ;;  %s2575_s14 = scalar_lea.vmem [#allocation18], %s2552_s28 }
 0x13a   : > { %1409 = vmatpush3.bf16.msra.mxu0 %v1631_v2  ;;  %1419 = vmatpush3.bf16.msra.mxu1 %v708_v18  ;;  %s2105_s10 = smov 92   ;;  %s2106_s11 = smov 80  }
 0x13b   : > { %1410 = vmatprep.subr.bf16.mxu0 %v2100_v0  ;;  %1447 = vmatprep.subr.bf16.mxu1 %v2102_v19  ;;  %s1062_s17 = sshll.u32 %s587_s1, 4  ;;  %s997_s3 = scalar_lea.sflag [#allocation22], %s2506_s2  ;;  %s2585_s17 = int_to_ptr.vmem [resolvable:$true] %s1062_s17 }
 0x13c   : > { %s1895_s4 = scalar_lea.vmem %s2585_s17, 128  ;;  %p2823_p12 = scmp.ne.s32.totalorder %s2808_s30, 0 }
 0x13d   : > { %p1896_p8 = scmp.ne.s32.totalorder %s2585_s17, %s1895_s4 }
 0x13e   : > { %1411 = vmatpush3.bf16.msra.mxu0 %v1632_v3 }
 0x13f   : > { %1439 = vmatprep.subr.bf16.mxu0 %v2100_v0  ;;  %s1381_s15 = sshll.u32 %s2821_s16, 7  ;;  %p1897_p13 = pnand %p1896_p8, %p2823_p12 }
 0x141   : > { %1413 = vmatmul.mubr.msk.bf16.vlgmr.msra.gmra.mrb[0].mxu0 %vm615_vm1, %v590_v5  ;;  %p1898_p6 = pneg %p1897_p13 }
 0x142   : > { %1443 = vmatprep.mubr.msk.bf16.mxu0 %vm2101_vm0, %v2100_v0  ;;  %1440 = vmatpush3.bf16.msra.mxu0 %v1635_v54 }
 0x143   : > { %1441 = vmatprep.subr.bf16.mxu0 %v2100_v0 }
 0x146   : > { %1442 = vmatpush3.bf16.msra.mxu0 %v1636_v55 }
 0x214   : > { %v653_v6 = vpop.f32.mrb[0].mxu0 }
 0x215   : > { %v1414_v7 = vpop.f32.mrb[1].mxu0  ;;  %v662_v8 = vsel %vm661_vm2, %v653_v6, 0.0 }
 0x216   : > { %663 = vadd.xlane.f32.xlu0 %v662_v8  ;;  %v656_v9 = vpop.f32.mrb[2].mxu0 }
 0x217   : > { %v1415_v10 = vpop.f32.mrb[3].mxu0 }
 0x2a3   : > { %v664_v11 = vpop.xlane.xlu0 %663 }
 0x2a4   : > { %v666_v12 = vmul.f32 0.041666668, %v664_v11 }
 0x2a6   : > { %v667_v13 = vsub.f32 %v653_v6, %v666_v12 }
 0x2a8   : > { %v668_v14 = vmul.f32 %v667_v13, %v667_v13 }
 0x2aa   : > { %v669_v15 = vsel %vm661_vm2, %v668_v14, 0.0 }
 0x2ab   : > { %670 = vadd.xlane.f32.xlu0 %v669_v15 }
 0x338   : > { %v671_v20 = vpop.xlane.xlu0 %670 }
 0x339   : > { %v672_v21 = vmul.f32 0.041666668, %v671_v20 }
 0x33b   : > { %v673_v22 = vadd.f32 1e-05, %v672_v21 }
 0x33d   : > { %1637 = vrsqrt.f32 %v673_v22 }
 0x347   : > { %v1638_v23 = vpop.eup %1637 }
 0x348   : > { %v675_v25 = vmul.f32 %v1638_v23, %v667_v13 }
 0x34a   : > { %v682_v27 = vmul.f32 %v1349_v24, %v675_v25 }
 0x34c   : > { %v689_v30 = vadd.f32 %v1350_v26, %v682_v27 }
 0x34e   : > { %v690_v32 = vpack.c.bf16 %v689_v30, %v689_v30 }
 0x350   : > { %1421 = vmatmul.mubr.msk.bf16.vlgmr.msra.gmra.mrb[0].mxu1 %vm661_vm2, %v690_v32 }
 0x351   : > { %1449 = vmatpush3.bf16.msra.mxu1 %v1448_v31  ;;  %1436 = vmatprep.mubr.msk.f32.mxu1 %vm2101_vm0, %v2100_v0 }
 0x352   : > { %1450 = vmatprep.subr.bf16.mxu1 %v2102_v19 }
 0x355   : > { %1452 = vmatpush3.bf16.msra.mxu1 %v1451_v35 }
 0x356   : > { %1453 = vmatprep.subr.bf16.mxu1 %v2102_v19 }
 0x359   : > { %1455 = vmatpush3.bf16.msra.mxu1 %v1454_v38 }
 0x35c   : > { %1437 = vmatmul.mubr.msk.f32.vlgmr.msra.gmra.mrb[4].mxu1 %vm615_vm1, %v589_v4 }
 0x423   : > { %v744_v39 = vpop.f32.mrb[0].mxu1 }
 0x424   : > { %v920_v40 = vpack.c.bf16 %v744_v39, %v744_v39  ;;  %v1422_v41 = vpop.f32.mrb[1].mxu1 }
 0x425   : > { %v747_v42 = vpop.f32.mrb[2].mxu1 }
 0x426   : > { %922 = vst.msk [vmem:[%s2555_s29] sm:$0xf] %vm921_vm4, %v920_v40  ;;  %935 = vrot.lane.b32.xlu0 %v920_v40, %s2103_s20  ;;  %v1423_v43 = vpop.f32.mrb[3].mxu1 }
 0x42a   : > { %950 = vrot.lane.b32.xlu0 %v920_v40, %s2104_s9 }
 0x42f   : > { %v825_v44 = vpop.f32.mrb[4].mxu1 }
 0x430   : > { %v1438_v45 = vpop.f32.mrb[5].mxu1  ;;  %v832_v46 = vsel %vm831_vm5, %v825_v44, 0.0 }
 0x431   : > { %833 = vadd.xlane.f32.xlu1 %v832_v46 }
 0x498   : > { %v936_v47 = vpop.permute.xlu0 %935 }
 0x499   : > { %1362 = vst.msk [vmem:[%s2555_s29 + $0x4] sm:$0xf] %vm921_vm4, %v936_v47 }
 0x49c   : > { %v951_v48 = vpop.permute.xlu0 %950 }
 0x49d   : > { %1365 = vst.msk [vmem:[%s2555_s29 + $0x8] sm:$0xf] %vm921_vm4, %v951_v48 }
 0x4be   : > { %v834_v49 = vpop.xlane.xlu1 %833 }
 0x4bf   : > { %v836_v50 = vmul.f32 0.03125, %v834_v49 }
 0x4c1   : > { %v837_v51 = vsub.f32 %v825_v44, %v836_v50 }
 0x4c3   : > { %v838_v52 = vmul.f32 %v837_v51, %v837_v51 }
 0x4c5   : > { %v839_v53 = vsel %vm831_vm5, %v838_v52, 0.0 }
 0x4c6   : > { %840 = vadd.xlane.f32.xlu1 %v839_v53 }
 0x553   : > { %v841_v56 = vpop.xlane.xlu1 %840 }
 0x554   : > { %v842_v57 = vmul.f32 0.03125, %v841_v56 }
 0x556   : > { %v843_v58 = vadd.f32 1e-05, %v842_v57 }
 0x558   : > { %1639 = vrsqrt.f32 %v843_v58 }
 0x562   : > { %v1640_v59 = vpop.eup %1639 }
 0x563   : > { %v845_v61 = vmul.f32 %v1640_v59, %v837_v51 }
 0x565   : > { %v852_v63 = vmul.f32 %v1355_v60, %v845_v61 }
 0x567   : > { %v859_v1 = vadd.f32 %v1356_v62, %v852_v63 }
 0x569   : > { %v860_v2 = vpack.c.bf16 %v859_v1, %v859_v1  ;;  %980 = vst.msk [vmem:[%s587_s1] sm:$0xff] %vm831_vm5, %v859_v1 }
 0x56b   : > { %1444 = vmatmul.mubr.msk.bf16.vlgmr.msra.gmra.mrb[4].mxu0 %vm831_vm5, %v860_v2 }
 0x63e   : > { %v914_v0 = vpop.f32.mrb[4].mxu0 }
 0x63f   : > { %v923_v3 = vpack.c.bf16 %v914_v0, %v914_v0  ;;  %v1445_v4 = vpop.f32.mrb[5].mxu0 }
 0x640   : > { %v917_v5 = vpop.f32.mrb[6].mxu0 }
 0x641   : > { %955 = vrot.lane.b32.xlu1 %v923_v3, %s2104_s9  ;;  %940 = vrot.lane.b32.xlu0 %v923_v3, %s2103_s20  ;;  %v1446_v6 = vpop.f32.mrb[7].mxu0  ;;  %924 = vst.msk [vmem:[%s2575_s14] sm:$0xf] %vm921_vm4, %v923_v3  ;;  %s2822_s9 = sld [smem:[#allocation42_spill]]  ;;  %s2107_s20 = smov 68  }
 0x645   : > { %970 = vrot.lane.b32.xlu1 %v923_v3, %s2105_s10  ;;  %965 = vrot.lane.b32.xlu0 %v920_v40, %s2105_s10  ;;  %s2108_s10 = smov [#allocation21]  }
 0x646   : > { %s1899_s1 = sshll.u32 %s2108_s10, 4  ;;  %s1900_s1 = int_to_ptr.vmem [resolvable:$false] %s1899_s1 }
 0x647   : > { %s2583_s0 = scalar_lea.hbm %s2822_s9, %s1381_s15  ;;  %p1902_p3 = scmp.lt.s32.totalorder %s2585_s17, %s1900_s1 }
 0x649   : > { %928 = vrot.lane.b32.xlu1 %v923_v3, %s2106_s11  ;;  %s1901_s11 = scalar_lea.vmem %s1900_s1, 256 }
 0x64a   : > { %p1903_p1 = scmp.lt.s32.totalorder %s1901_s11, %s1895_s4 }
 0x64c   : > { %p1904_p4 = por %p1903_p1, %p1902_p3 }
 0x64d   : > { %945 = vrot.lane.b32.xlu1 %v923_v3, %s2107_s20 }
 0x64e   : > { %p1905_p9 = pnand %p1904_p4, %p1898_p6 }
 0x650   : > { %1908 = shalt.err (!%p1905_p9)
}
 0x651   : > { %s1909_s15 = scalar_lea.hbm %s2583_s0, 128  ;;  %s1913_s20 = scalar_lea.hbm %s2822_s9, 256 }
 0x652   : > { %p1910_p10 = scmp.ne.s32.totalorder %s2583_s0, %s1909_s15  ;;  %p1914_p7 = scmp.lt.u32.totalorder %s2583_s0, %s2822_s9 }
 0x653   : > { %p1915_p2 = scmp.lt.u32.totalorder %s1913_s20, %s1909_s15  ;;  %p1917_p8 = scmp.lt.u32.totalorder %s1909_s15, %s2583_s0 }
 0x654   : > { %p1911_p11 = pnand %p1910_p10, %p2823_p12 }
 0x655   : > { %p1916_p5 = por %p1915_p2, %p1914_p7 }
 0x656   : > { %p1912_p0 = pneg %p1911_p11 }
 0x657   : > { %p1918_p13 = por %p1917_p8, %p1916_p5 }
 0x659   : > { %p1919_p6 = pnand %p1918_p13, %p1912_p0 }
 0x65b   : > { %1922 = shalt.err (!%p1919_p6)
}
 0x65c   : > { %1493 = dma.vmem_to_hbm [thread:$0]  (%p2823_p12), %s2585_s17, 128, %s2583_s0, %s997_s3  }
 0x65d   : > { %s2109_s4 = smov 56   ;;  %s2110_s11 = smov 44  }
 0x65e   : > { %960 = vrot.lane.b32.xlu1 %v923_v3, %s2109_s4  ;;  %s1011_s15 = sshll.u32 %s2555_s29, 4  ;;  %s1028_s18 = sshll.u32 %s2575_s14, 4  ;;  %s2615_s15 = int_to_ptr.vmem [resolvable:$true] %s1011_s15  ;;  %s2617_s18 = int_to_ptr.vmem [resolvable:$true] %s1028_s18 }
 0x65f   : > { %s986_s24 = sand.u32 1, %s2212_s27   ;;  %s2613_s20 = sshll.u32 %s2821_s16, 8 }
 0x660   : > { %s2824_s27 = sld [smem:[#allocation40_spill]]  ;;  %s2825_s1 = sld [smem:[#allocation39_spill]] }
 0x661   : > { %s1923_s5 = scalar_lea.vmem %s2617_s18, 256  ;;  %s2111_s0 = smov [#allocation18]  }
 0x662   : > { %975 = vrot.lane.b32.xlu1 %v923_v3, %s2110_s11  ;;  %s2639_s11 = scalar_lea.sflag [#allocation19], %s986_s24  ;;  %p1924_p3 = scmp.ne.s32.totalorder %s2617_s18, %s1923_s5 }
 0x663   : > { %s1927_s3 = sshll.u32 %s2111_s0, 4  ;;  %s1928_s3 = int_to_ptr.vmem [resolvable:$false] %s1927_s3 }
 0x664   : > { %p1925_p1 = pnand %p1924_p3, %p2823_p12  ;;  %s1929_s6 = scalar_lea.vmem %s1928_s3, 512 }
 0x665   : > { %p1930_p9 = scmp.lt.s32.totalorder %s2617_s18, %s1928_s3  ;;  %p1931_p10 = scmp.lt.s32.totalorder %s1929_s6, %s1923_s5 }
 0x666   : > { %s2627_s17 = scalar_lea.hbm %s2824_s27, %s2613_s20  ;;  %s2633_s4 = scalar_lea.hbm %s2825_s1, %s2613_s20 }
 0x667   : > { %p1926_p4 = pneg %p1925_p1  ;;  %p1932_p11 = por %p1931_p10, %p1930_p9 }
 0x669   : > { %p1933_p0 = pnand %p1932_p11, %p1926_p4 }
 0x6b3   : > { %v956_v7 = vpop.permute.xlu1 %955  ;;  %v941_v8 = vpop.permute.xlu0 %940 }
 0x6b4   : > { %1366 = vst.msk [vmem:[%s2575_s14 + $0x8] sm:$0xf] %vm921_vm4, %v956_v7  ;;  %1363 = vst.msk [vmem:[%s2575_s14 + $0x4] sm:$0xf] %vm921_vm4, %v941_v8 }
 0x6b7   : > { %v971_v9 = vpop.permute.xlu1 %970  ;;  %v966_v10 = vpop.permute.xlu0 %965 }
 0x6b8   : > { %1369 = vst.msk [vmem:[%s2575_s14 + $0xc] sm:$0xf] %vm921_vm4, %v971_v9  ;;  %1368 = vst.msk [vmem:[%s2555_s29 + $0xc] sm:$0xf] %vm921_vm4, %v966_v10 }
 0x6b9   : > { %1936 = shalt.err (!%p1933_p0)
}
 0x6ba   : > { %s1937_s29 = scalar_lea.hbm %s2627_s17, 256  ;;  %s1941_s16 = scalar_lea.hbm %s2824_s27, 512 }
 0x6bb   : > { %p1938_p7 = scmp.ne.s32.totalorder %s2627_s17, %s1937_s29  ;;  %p1942_p8 = scmp.lt.u32.totalorder %s2627_s17, %s2824_s27 }
 0x6bc   : > { %p1943_p13 = scmp.lt.u32.totalorder %s1941_s16, %s1937_s29  ;;  %p1945_p3 = scmp.lt.u32.totalorder %s1937_s29, %s2627_s17 }
 0x6bd   : > { %p1939_p2 = pnand %p1938_p7, %p2823_p12 }
 0x6be   : > { %p1944_p6 = por %p1943_p13, %p1942_p8 }
 0x6bf   : > { %p1940_p5 = pneg %p1939_p2 }
 0x6c0   : > { %p1946_p1 = por %p1945_p3, %p1944_p6 }
 0x6c2   : > { %p1947_p4 = pnand %p1946_p1, %p1940_p5 }
 0x6c4   : > { %1950 = shalt.err (!%p1947_p4)
}
 0x6c5   : > { %s2112_s5 = smov 64   ;;  %s2113_s6 = smov 4  }
 0x6c6   : > { %1491 = dma.vmem_to_hbm [thread:$0]  (%p2823_p12), %s2617_s18, 256, %s2627_s17, %s2639_s11, %s2112_s5, %s2112_s5, %s2113_s6  }
 0x6c7   : > { %s982_s3 = scalar_lea.sflag [#allocation4], %s2506_s2  ;;  %s1951_s29 = scalar_lea.vmem %s2615_s15, 256 }
 0x6c8   : > { %p1952_p9 = scmp.ne.s32.totalorder %s2615_s15, %s1951_s29  ;;  %s2114_s14 = smov [#allocation17]  }
 0x6c9   : > { %s1955_s24 = sshll.u32 %s2114_s14, 4  ;;  %s1956_s24 = int_to_ptr.vmem [resolvable:$false] %s1955_s24 }
 0x6ca   : > { %p1953_p10 = pnand %p1952_p9, %p2823_p12  ;;  %s1957_s16 = scalar_lea.vmem %s1956_s24, 512 }
 0x6cb   : > { %p1958_p0 = scmp.lt.s32.totalorder %s2615_s15, %s1956_s24  ;;  %p1959_p7 = scmp.lt.s32.totalorder %s1957_s16, %s1951_s29 }
 0x6cc   : > { %p1954_p11 = pneg %p1953_p10 }
 0x6cd   : > { %p1960_p2 = por %p1959_p7, %p1958_p0 }
 0x6cf   : > { %p1961_p5 = pnand %p1960_p2, %p1954_p11 }
 0x6d1   : > { %1964 = shalt.err (!%p1961_p5)
}
 0x6d2   : > { %s1965_s18 = scalar_lea.hbm %s2633_s4, 256  ;;  %s1969_s0 = scalar_lea.hbm %s2825_s1, 512 }
 0x6d3   : > { %p1966_p8 = scmp.ne.s32.totalorder %s2633_s4, %s1965_s18  ;;  %p1970_p3 = scmp.lt.u32.totalorder %s2633_s4, %s2825_s1 }
 0x6d4   : > { %p1971_p1 = scmp.lt.u32.totalorder %s1969_s0, %s1965_s18  ;;  %p1973_p9 = scmp.lt.u32.totalorder %s1965_s18, %s2633_s4 }
 0x6d5   : > { %p1967_p13 = pnand %p1966_p8, %p2823_p12 }
 0x6d6   : > { %p1972_p4 = por %p1971_p1, %p1970_p3 }
 0x6d7   : > { %p1968_p6 = pneg %p1967_p13 }
 0x6d8   : > { %p1974_p10 = por %p1973_p9, %p1972_p4 }
 0x6da   : > { %p1975_p11 = pnand %p1974_p10, %p1968_p6 }
 0x6dc   : > { %1978 = shalt.err (!%p1975_p11)
}
 0x6dd   : > { %1490 = dma.vmem_to_hbm [thread:$0]  (%p2823_p12), %s2615_s15, 256, %s2633_s4, %s982_s3, %s2112_s5, %s2112_s5, %s2113_s6   ;;  %v929_v11 = vpop.permute.xlu1 %928 }
 0x6de   : > { %s580_s29 = scalar_lea.vmem [#allocation20], %s2552_s28  ;;  %s2826_s17 = sld [smem:[#allocation41_spill]] }
 0x6df   : > { %931 = vst.msk [vmem:[%s580_s29] sm:$0xf] %vm921_vm4, %v929_v11  ;;  %s1045_s16 = sshll.u32 %s580_s29, 4  ;;  %s2115_s4 = smov [#allocation20]   ;;  %s2697_s16 = int_to_ptr.vmem [resolvable:$true] %s1045_s16 }
 0x6e0   : > { %s1979_s28 = scalar_lea.vmem %s2697_s16, 256  ;;  %s1983_s3 = sshll.u32 %s2115_s4, 4  ;;  %s1984_s3 = int_to_ptr.vmem [resolvable:$false] %s1983_s3 }
 0x6e1   : > { %v946_v12 = vpop.permute.xlu1 %945  ;;  %p1980_p0 = scmp.ne.s32.totalorder %s2697_s16, %s1979_s28  ;;  %s1985_s10 = scalar_lea.vmem %s1984_s3, 512 }
 0x6e2   : > { %1364 = vst.msk [vmem:[%s580_s29 + $0x4] sm:$0xf] %vm921_vm4, %v946_v12  ;;  %p1986_p5 = scmp.lt.s32.totalorder %s2697_s16, %s1984_s3  ;;  %p1987_p8 = scmp.lt.s32.totalorder %s1985_s10, %s1979_s28 }
 0x6e3   : > { %p1981_p7 = pnand %p1980_p0, %p2823_p12 }
 0x6e4   : > { %s2703_s15 = scalar_lea.hbm %s2826_s17, %s2613_s20  ;;  %p1988_p13 = por %p1987_p8, %p1986_p5 }
 0x6e5   : > { %v961_v13 = vpop.permute.xlu1 %960  ;;  %p1982_p2 = pneg %p1981_p7 }
 0x6e6   : > { %1367 = vst.msk [vmem:[%s580_s29 + $0x8] sm:$0xf] %vm921_vm4, %v961_v13 }
 0x6e7   : > { %p1989_p6 = pnand %p1988_p13, %p1982_p2 }
 0x6e9   : > { %v976_v14 = vpop.permute.xlu1 %975 }
 0x6ea   : > { %1370 = vst.msk [vmem:[%s580_s29 + $0xc] sm:$0xf] %vm921_vm4, %v976_v14 }
 0x6eb   : > { %1992 = shalt.err (!%p1989_p6)
}
 0x6ec   : > { %s1993_s20 = scalar_lea.hbm %s2703_s15, 256  ;;  %s1997_s24 = scalar_lea.hbm %s2826_s17, 512 }
 0x6ed   : > { %p1994_p3 = scmp.ne.s32.totalorder %s2703_s15, %s1993_s20  ;;  %p1998_p9 = scmp.lt.u32.totalorder %s2703_s15, %s2826_s17 }
 0x6ee   : > { %p1999_p10 = scmp.lt.u32.totalorder %s1997_s24, %s1993_s20  ;;  %p2001_p0 = scmp.lt.u32.totalorder %s1993_s20, %s2703_s15 }
 0x6ef   : > { %p1995_p1 = pnand %p1994_p3, %p2823_p12 }
 0x6f0   : > { %p2000_p11 = por %p1999_p10, %p1998_p9 }
 0x6f1   : > { %p1996_p4 = pneg %p1995_p1 }
 0x6f2   : > { %p2002_p7 = por %p2001_p0, %p2000_p11 }
 0x6f4   : > { %p2003_p2 = pnand %p2002_p7, %p1996_p4 }
 0x6f6   : > { %2006 = shalt.err (!%p2003_p2)
}
 0x6f7   : > { %1492 = dma.vmem_to_hbm [thread:$0]  (%p2823_p12), %s2697_s16, 256, %s2703_s15, %s2639_s11, %s2112_s5, %s2112_s5, %s2113_s6  }
 0x6f8 PF: > { %s1074_s18 = sand.u32 1, %s2065_s21   ;;  %p2827_p5 = scmp.ne.s32.totalorder %s2809_s19, 0 }
 0x6f9   : > { %p2828_p8 = scmp.ge.s32.totalorder %s2085_s26, 2  ;;  %s1075_s28 = scalar_lea.sflag [#allocation4], %s1074_s18 }
 0x6fb   : > { %p1528_p13 = pnand %p2828_p8, %p2827_p5 }
 0x6fd   : > { %2052 = dma.done.wait (!%p1528_p13), %s1075_s28, 256  }
 0x6fe   : > { %2054 = vsyncadd (!%p1528_p13), %s1075_s28, 4294967040  ;;  %s2829_s30 = sadd.s32 4294967294, %s2085_s26  }
 0x6ff   : > { %s1083_s4 = sand.u32 1, %s2829_s30  }
 0x700   : > { %s1084_s3 = scalar_lea.sflag [#allocation19], %s1083_s4 }
 0x701   : > { %2056 = dma.done.wait (!%p1528_p13), %s1084_s3, 512  }
 0x702   : > { %2058 = vsyncadd (!%p1528_p13), %s1084_s3, 4294966784  ;;  %s1102_s10 = scalar_lea.sflag [#allocation22], %s1074_s18 }
 0x703   : > { %2060 = dma.done.wait (!%p1528_p13), %s1102_s10, 128  }
 0x704   : > { %2062 = vsyncadd (!%p1528_p13), %s1102_s10, 4294967168  ;;  %s39_s26 = sadd.s32 1, %s2085_s26   ;;  %s2830_s21 = smov %s2069_s22 }
 0x705   : > { %p36_p12 = scmp.ge.s32.totalorder %s39_s26, 4   ;;  %s2831_s22 = smov %s2073_s23 }
 0x706   : > { %s2832_s23 = smov %s2456_s12  ;;  %s2833_s24 = smov %s2081_s25 }
 0x707   : > { %s2834_s25 = smov %s2836_s13  ;;  %38 = sbr.rel (!%p36_p12) target bundleno = 26 (0x1a), region = 191 }
 0x70e   :  { %1107 = vsyncpa [#allocation3], 1 }
 0x70f   :  { %1109 = vsyncpa [#allocation3 + $0x1], 1 }
 0x710   :  { %1110 = vsyncpa [#allocation6], 1 }
 0x711   :  { %1111 = vsyncpa [#allocation9], 1 }
 0x712   :  { %1112 = vsyncpa [#allocation12], 1 }
 0x713   :  { %1113 = vsyncpa [#allocation15], 1 }
 0x714   :  { %1114 = vsyncpa [#allocation4], 1 }
 0x715   :  { %1116 = vsyncpa [#allocation4 + $0x1], 1 }
 0x716   :  { %1117 = vsyncpa [#allocation19], 1 }
 0x717   :  { %1119 = vsyncpa [#allocation19 + $0x1], 1 }
 0x718   :  { %1120 = vsyncpa [#allocation22], 1 }
 0x719   :  { %1122 = vsyncpa [#allocation22 + $0x1], 1 }

</bundles_post_ra>
